<compile_context>
chip_gen: v7x
topology: tpu7x:2x2x1
jax: 0.10.0
libtpu: 0.0.40
codegen_flags: <defaults>
</compile_context>

<pallas_src>
import functools
import math

import jax
import jax.numpy as jnp
from jax.experimental import pallas as pl
from jax.experimental.pallas import tpu as pltpu


def _round_up(n: int, m: int) -> int:
    return ((n + m - 1) // m) * m


def _vmem_capacity_bytes() -> int:
    try:
        return int(pltpu.get_tpu_info().vmem_capacity_bytes)
    except Exception:
        return 64 * 2**20  # conservative default (v7x per-TensorCore)


def _mlp_kernel(x_ref,
                w1_ref, b1_ref, w2_ref, b2_ref, w3_ref, b3_ref,
                w4_ref, b4_ref, w5_ref, b5_ref,
                o_ref, *, use_bf16: bool):
    """Fused 5-layer MLP forward for one batch tile with lane-dense packed output."""
    mm_dtype = jnp.bfloat16 if use_bf16 else jnp.float32

    def layer(h, w_ref, b_ref, relu):
        acc = jnp.dot(h.astype(mm_dtype), w_ref[...].astype(mm_dtype),
                      preferred_element_type=jnp.float32)
        acc = acc + b_ref[...]            # bias-add / ReLU stay f32 (v5e-safe)
        return jnp.maximum(acc, 0.0) if relu else acc

    h = x_ref[...]
    h = layer(h, w1_ref, b1_ref, True)
    h = layer(h, w2_ref, b2_ref, True)
    h = layer(h, w3_ref, b3_ref, True)
    h = layer(h, w4_ref, b4_ref, True)
    h = layer(h, w5_ref, b5_ref, False)   # (TILE_B, 128) f32; column 0 is the logit

    # Pack column 0 into a lane-dense (TILE_B//128, 128) slab so the HBM writeback
    # is 128x smaller than the padded store; XLU 128x128 transposes are ~free here.
    nb = h.shape[0] // 128
    rows = [h[r * 128:(r + 1) * 128, :].T[0:1, :] for r in range(nb)]
    packed = rows[0] if nb == 1 else jnp.concatenate(rows, axis=0)
    o_ref[...] = packed.astype(o_ref.dtype)


def mlp_classifier_forward(x, params, *, tile_b: int = 1024, use_bf16: bool = False):
    """x: (B, F) float32.  params: list of (W_(in,out), b_(1,out)) pairs (unpadded)."""
    B, F = x.shape

    in_dims = [F] + [w.shape[1] for w, _ in params[:-1]]
    out_dims = [w.shape[1] for w, _ in params]
    in_pads = [_round_up(d, 128) for d in in_dims]
    out_pads = [_round_up(d, 128) for d in out_dims]
    F_pad = in_pads[0]

    # Zero-pad weights/biases to 128-multiples: padded rows/cols contribute exact zeros.
    padded = []
    for (w, b), ip, op in zip(params, in_pads, out_pads):
        wp = jnp.pad(w, ((0, ip - w.shape[0]), (0, op - w.shape[1])))
        bp = jnp.pad(b, ((0, 0), (0, op - b.shape[1])))
        if use_bf16:
            wp = wp.astype(jnp.bfloat16)   # halves resident weight VMEM + weight DMA
        padded.append((wp, bp))

    # Batch tiling: packed output needs TILE_B % 128 == 0; multi-step grids need
    # TILE_B % 1024 == 0 so the packed (TILE_B//128, 128) out-block is 8-sublane aligned.
    if B <= tile_b:
        TILE_B = max(128, _round_up(B, 128))
    else:
        TILE_B = max(1024, _round_up(tile_b, 1024))
    B_pad = _round_up(B, TILE_B)

    x_dtype = jnp.bfloat16 if use_bf16 else jnp.float32
    x_pad = jnp.pad(x, ((0, B_pad - B), (0, F_pad - F))).astype(x_dtype)

    grid = (B_pad // TILE_B,)
    out_rows_per_tile = TILE_B // 128
    out_shape = jax.ShapeDtypeStruct((B_pad // 128, 128), jnp.float32)
    out_specs = pl.BlockSpec((out_rows_per_tile, 128), lambda i: (i, 0))

    resident = sum(w.size * w.dtype.itemsize + b.size * b.dtype.itemsize
                   for w, b in padded)
    cap = _vmem_capacity_bytes()
    # TODO(synk): add a K-tiled weight path (reduction grid / pltpu.emit_pipeline)
    # when `resident` exceeds ~40% of VMEM capacity (in_feature >~ 1000 on v7x).

    flat = [x_pad]
    for wp, bp in padded:
        flat += [wp, bp]

    kernel = functools.partial(_mlp_kernel, use_bf16=use_bf16)

    def build(single_buffer_weights: bool):
        wb_kwargs = dict(pipeline_mode=pl.Buffered(1)) if single_buffer_weights else {}
        in_specs = [pl.BlockSpec((TILE_B, F_pad), lambda i: (i, 0))]
        for wp, bp in padded:
            in_specs.append(pl.BlockSpec(wp.shape, lambda i: (0, 0), **wb_kwargs))
            in_specs.append(pl.BlockSpec(bp.shape, lambda i: (0, 0), **wb_kwargs))

        # VMEM budget: resident weights (1x if single-buffered), double-buffered
        # x/out tiles, in-kernel f32 intermediates, plus headroom; capped at ~87.5%
        # of the generation's actual VMEM (128 MiB on v5e/v6e, 64 MiB on v7x).
        w_factor = 1 if single_buffer_weights else 2
        act_io = (2 * TILE_B * F_pad * x_pad.dtype.itemsize
                  + 2 * out_rows_per_tile * 128 * 4)
        temps = 4 * TILE_B * max(out_pads) * 4
        need = w_factor * resident + act_io + temps + (2 << 20)
        vmem_limit = int(min(int(0.875 * cap), max(8 << 20, need)))

        return pl.pallas_call(
            kernel,
            out_shape=out_shape,
            grid=grid,
            in_specs=in_specs,
            out_specs=out_specs,
            compiler_params=pltpu.CompilerParams(
                dimension_semantics=("parallel",),
                vmem_limit_bytes=vmem_limit,
            ),
        )

    try:
        out = jax.block_until_ready(build(True)(*flat))
    except Exception:
        # Fallback if this Pallas build rejects Buffered(1) on inputs: identical
        # math, just default double-buffering for the constant-index weights.
        out = build(False)(*flat)

    # Packed layout: flat index == global batch row; slice off padded rows.
    return out.reshape(-1)[:B].reshape(B, 1)


def _xavier_uniform(key, fan_in, fan_out):
    # matches torch.nn.init.xavier_uniform_ (gain=1); stored as (in, out)
    limit = math.sqrt(6.0 / (fan_in + fan_out))
    return jax.random.uniform(key, (fan_in, fan_out), jnp.float32, -limit, limit)


def _default_bias(key, fan_in, fan_out):
    # PyTorch default Linear bias init: U(-1/sqrt(fan_in), 1/sqrt(fan_in))
    bound = 1.0 / math.sqrt(fan_in)
    return jax.random.uniform(key, (1, fan_out), jnp.float32, -bound, bound)


def make_params(in_feature, key):
    dims = [
        (in_feature, in_feature * 2),
        (in_feature * 2, in_feature * 2 + 10),
        (in_feature * 2 + 10, in_feature * 2 + 20),
        (in_feature * 2 + 20, in_feature * 2 + 10),
        (in_feature * 2 + 10, 1),
    ]
    params = []
    for (fi, fo) in dims:
        key, kw, kb = jax.random.split(key, 3)
        params.append((_xavier_uniform(kw, fi, fo), _default_bias(kb, fi, fo)))
    return params


def _reference(x, params):
    h = x
    for i, (w, b) in enumerate(params):
        h = h @ w + b
        if i < len(params) - 1:
            h = jnp.maximum(h, 0.0)
    return h


if __name__ == "__main__":
    key = jax.random.PRNGKey(0)
    k_in, k_par = jax.random.split(key)

    B = 8
    IN_FEATURE = 32

    # (B, 1, F) -> squeeze(axis=1) -> (B, F); axis=1 keeps B even when B == 1.
    feature_matrix_batch = jax.random.normal(k_in, (B, 1, IN_FEATURE), jnp.float32)
    x = jnp.squeeze(feature_matrix_batch, axis=1)

    params = make_params(IN_FEATURE, k_par)
    ref = _reference(x, params)

    # f32 path (exact semantics of the PyTorch module)
    out_f32 = jax.block_until_ready(mlp_classifier_forward(x, params, use_bf16=False))
    assert out_f32.shape == (B, 1)
    assert jnp.allclose(out_f32, ref, atol=1e-4, rtol=1e-4)

    # bf16-matmul / f32-accumulate path (throughput option on all generations)
    out_bf16 = jax.block_until_ready(mlp_classifier_forward(x, params, use_bf16=True))
    assert out_bf16.shape == (B, 1)
    assert bool(jnp.all(jnp.isfinite(out_bf16)))
    assert jnp.allclose(out_bf16, ref, atol=1e-1)

    print("KERNEL_OK")
</pallas_src>

<mosaic_0001>
module attributes {stable_mosaic.version = 11 : i64} {
  func.func @_mlp_kernel(%arg0: i32, %arg1: memref<128x128xf32, #tpu.memory_space<vmem>>, %arg2: memref<128x128xf32, #tpu.memory_space<vmem>>, %arg3: memref<1x128xf32, #tpu.memory_space<vmem>>, %arg4: memref<128x128xf32, #tpu.memory_space<vmem>>, %arg5: memref<1x128xf32, #tpu.memory_space<vmem>>, %arg6: memref<128x128xf32, #tpu.memory_space<vmem>>, %arg7: memref<1x128xf32, #tpu.memory_space<vmem>>, %arg8: memref<128x128xf32, #tpu.memory_space<vmem>>, %arg9: memref<1x128xf32, #tpu.memory_space<vmem>>, %arg10: memref<128x128xf32, #tpu.memory_space<vmem>>, %arg11: memref<1x128xf32, #tpu.memory_space<vmem>>, %arg12: memref<1x128xf32, #tpu.memory_space<vmem>>) attributes {dimension_semantics = [#tpu.dimension_semantics<parallel>], iteration_bounds = array<i64: 1>, scalar_prefetch = 0 : i64, scratch_operands = 0 : i64, tpu.core_type = #tpu.core_type<tc>, window_params = [{transform_indices = @transform_0, window_bounds = array<i64: 128, 128>}, {pipeline_mode = #tpu.pipeline_mode<synchronous>, transform_indices = @transform_1, window_bounds = array<i64: 128, 128>}, {pipeline_mode = #tpu.pipeline_mode<synchronous>, transform_indices = @transform_2, window_bounds = array<i64: 1, 128>}, {pipeline_mode = #tpu.pipeline_mode<synchronous>, transform_indices = @transform_3, window_bounds = array<i64: 128, 128>}, {pipeline_mode = #tpu.pipeline_mode<synchronous>, transform_indices = @transform_4, window_bounds = array<i64: 1, 128>}, {pipeline_mode = #tpu.pipeline_mode<synchronous>, transform_indices = @transform_5, window_bounds = array<i64: 128, 128>}, {pipeline_mode = #tpu.pipeline_mode<synchronous>, transform_indices = @transform_6, window_bounds = array<i64: 1, 128>}, {pipeline_mode = #tpu.pipeline_mode<synchronous>, transform_indices = @transform_7, window_bounds = array<i64: 128, 128>}, {pipeline_mode = #tpu.pipeline_mode<synchronous>, transform_indices = @transform_8, window_bounds = array<i64: 1, 128>}, {pipeline_mode = #tpu.pipeline_mode<synchronous>, transform_indices = @transform_9, window_bounds = array<i64: 128, 128>}, {pipeline_mode = #tpu.pipeline_mode<synchronous>, transform_indices = @transform_10, window_bounds = array<i64: 1, 128>}, {transform_indices = @transform_11, window_bounds = array<i64: 1, 128>}]} {
    %c0 = arith.constant 0 : index
    %c0_0 = arith.constant 0 : index
    %0 = vector.load %arg1[%c0, %c0_0] : memref<128x128xf32, #tpu.memory_space<vmem>>, vector<128x128xf32>
    %c0_1 = arith.constant 0 : index
    %c0_2 = arith.constant 0 : index
    %1 = vector.load %arg2[%c0_1, %c0_2] : memref<128x128xf32, #tpu.memory_space<vmem>>, vector<128x128xf32>
    %cst = arith.constant dense<0.000000e+00> : vector<128x128xf32>
    %2 = tpu.matmul %0, %1, %cst {dimension_numbers = #tpu.dot_dimension_numbers<[1], [0], [0], [1], [0, 0, 1, 1], [], []>} : vector<128x128xf32>, vector<128x128xf32>, vector<128x128xf32> -> vector<128x128xf32>
    %c0_3 = arith.constant 0 : index
    %c0_4 = arith.constant 0 : index
    %3 = vector.load %arg3[%c0_3, %c0_4] : memref<1x128xf32, #tpu.memory_space<vmem>>, vector<1x128xf32>
    %4 = vector.broadcast %3 : vector<1x128xf32> to vector<128x128xf32>
    %5 = arith.addf %2, %4 : vector<128x128xf32>
    %cst_5 = arith.constant 0.000000e+00 : f32
    %6 = vector.broadcast %cst_5 : f32 to vector<128x128xf32>
    %7 = arith.maximumf %5, %6 : vector<128x128xf32>
    %c0_6 = arith.constant 0 : index
    %c0_7 = arith.constant 0 : index
    %8 = vector.load %arg4[%c0_6, %c0_7] : memref<128x128xf32, #tpu.memory_space<vmem>>, vector<128x128xf32>
    %cst_8 = arith.constant dense<0.000000e+00> : vector<128x128xf32>
    %9 = tpu.matmul %7, %8, %cst_8 {dimension_numbers = #tpu.dot_dimension_numbers<[1], [0], [0], [1], [0, 0, 1, 1], [], []>} : vector<128x128xf32>, vector<128x128xf32>, vector<128x128xf32> -> vector<128x128xf32>
    %c0_9 = arith.constant 0 : index
    %c0_10 = arith.constant 0 : index
    %10 = vector.load %arg5[%c0_9, %c0_10] : memref<1x128xf32, #tpu.memory_space<vmem>>, vector<1x128xf32>
    %11 = vector.broadcast %10 : vector<1x128xf32> to vector<128x128xf32>
    %12 = arith.addf %9, %11 : vector<128x128xf32>
    %cst_11 = arith.constant 0.000000e+00 : f32
    %13 = vector.broadcast %cst_11 : f32 to vector<128x128xf32>
    %14 = arith.maximumf %12, %13 : vector<128x128xf32>
    %c0_12 = arith.constant 0 : index
    %c0_13 = arith.constant 0 : index
    %15 = vector.load %arg6[%c0_12, %c0_13] : memref<128x128xf32, #tpu.memory_space<vmem>>, vector<128x128xf32>
    %cst_14 = arith.constant dense<0.000000e+00> : vector<128x128xf32>
    %16 = tpu.matmul %14, %15, %cst_14 {dimension_numbers = #tpu.dot_dimension_numbers<[1], [0], [0], [1], [0, 0, 1, 1], [], []>} : vector<128x128xf32>, vector<128x128xf32>, vector<128x128xf32> -> vector<128x128xf32>
    %c0_15 = arith.constant 0 : index
    %c0_16 = arith.constant 0 : index
    %17 = vector.load %arg7[%c0_15, %c0_16] : memref<1x128xf32, #tpu.memory_space<vmem>>, vector<1x128xf32>
    %18 = vector.broadcast %17 : vector<1x128xf32> to vector<128x128xf32>
    %19 = arith.addf %16, %18 : vector<128x128xf32>
    %cst_17 = arith.constant 0.000000e+00 : f32
    %20 = vector.broadcast %cst_17 : f32 to vector<128x128xf32>
    %21 = arith.maximumf %19, %20 : vector<128x128xf32>
    %c0_18 = arith.constant 0 : index
    %c0_19 = arith.constant 0 : index
    %22 = vector.load %arg8[%c0_18, %c0_19] : memref<128x128xf32, #tpu.memory_space<vmem>>, vector<128x128xf32>
    %cst_20 = arith.constant dense<0.000000e+00> : vector<128x128xf32>
    %23 = tpu.matmul %21, %22, %cst_20 {dimension_numbers = #tpu.dot_dimension_numbers<[1], [0], [0], [1], [0, 0, 1, 1], [], []>} : vector<128x128xf32>, vector<128x128xf32>, vector<128x128xf32> -> vector<128x128xf32>
    %c0_21 = arith.constant 0 : index
    %c0_22 = arith.constant 0 : index
    %24 = vector.load %arg9[%c0_21, %c0_22] : memref<1x128xf32, #tpu.memory_space<vmem>>, vector<1x128xf32>
    %25 = vector.broadcast %24 : vector<1x128xf32> to vector<128x128xf32>
    %26 = arith.addf %23, %25 : vector<128x128xf32>
    %cst_23 = arith.constant 0.000000e+00 : f32
    %27 = vector.broadcast %cst_23 : f32 to vector<128x128xf32>
    %28 = arith.maximumf %26, %27 : vector<128x128xf32>
    %c0_24 = arith.constant 0 : index
    %c0_25 = arith.constant 0 : index
    %29 = vector.load %arg10[%c0_24, %c0_25] : memref<128x128xf32, #tpu.memory_space<vmem>>, vector<128x128xf32>
    %cst_26 = arith.constant dense<0.000000e+00> : vector<128x128xf32>
    %30 = tpu.matmul %28, %29, %cst_26 {dimension_numbers = #tpu.dot_dimension_numbers<[1], [0], [0], [1], [0, 0, 1, 1], [], []>} : vector<128x128xf32>, vector<128x128xf32>, vector<128x128xf32> -> vector<128x128xf32>
    %c0_27 = arith.constant 0 : index
    %c0_28 = arith.constant 0 : index
    %31 = vector.load %arg11[%c0_27, %c0_28] : memref<1x128xf32, #tpu.memory_space<vmem>>, vector<1x128xf32>
    %32 = vector.broadcast %31 : vector<1x128xf32> to vector<128x128xf32>
    %33 = arith.addf %30, %32 : vector<128x128xf32>
    %34 = tpu.transpose %33, [1, 0] : vector<128x128xf32> -> vector<128x128xf32>
    %35 = vector.extract_strided_slice %34 {offsets = [0, 0], sizes = [1, 128], strides = [1, 1]} : vector<128x128xf32> to vector<1x128xf32>
    %c0_29 = arith.constant 0 : index
    %c0_30 = arith.constant 0 : index
    %36 = vector.load %arg12[%c0_29, %c0_30] : memref<1x128xf32, #tpu.memory_space<vmem>>, vector<1x128xf32>
    tpu.vector_store %arg12[%c0_29, %c0_30], %35 {strides = array<i32>} : memref<1x128xf32, #tpu.memory_space<vmem>>, vector<1x128xf32>,
    return
  }
  func.func @transform_0(%arg0: i32) -> (i32, i32) {
    %c0_i32 = arith.constant 0 : i32
    %c0_i32_0 = arith.constant 0 : i32
    return %arg0, %c0_i32 : i32, i32
  }
  func.func @transform_1(%arg0: i32) -> (i32, i32) {
    %c0_i32 = arith.constant 0 : i32
    %c0_i32_0 = arith.constant 0 : i32
    %c0_i32_1 = arith.constant 0 : i32
    return %c0_i32, %c0_i32_0 : i32, i32
  }
  func.func @transform_2(%arg0: i32) -> (i32, i32) {
    %c0_i32 = arith.constant 0 : i32
    %c0_i32_0 = arith.constant 0 : i32
    %c0_i32_1 = arith.constant 0 : i32
    return %c0_i32, %c0_i32_0 : i32, i32
  }
  func.func @transform_3(%arg0: i32) -> (i32, i32) {
    %c0_i32 = arith.constant 0 : i32
    %c0_i32_0 = arith.constant 0 : i32
    %c0_i32_1 = arith.constant 0 : i32
    return %c0_i32, %c0_i32_0 : i32, i32
  }
  func.func @transform_4(%arg0: i32) -> (i32, i32) {
    %c0_i32 = arith.constant 0 : i32
    %c0_i32_0 = arith.constant 0 : i32
    %c0_i32_1 = arith.constant 0 : i32
    return %c0_i32, %c0_i32_0 : i32, i32
  }
  func.func @transform_5(%arg0: i32) -> (i32, i32) {
    %c0_i32 = arith.constant 0 : i32
    %c0_i32_0 = arith.constant 0 : i32
    %c0_i32_1 = arith.constant 0 : i32
    return %c0_i32, %c0_i32_0 : i32, i32
  }
  func.func @transform_6(%arg0: i32) -> (i32, i32) {
    %c0_i32 = arith.constant 0 : i32
    %c0_i32_0 = arith.constant 0 : i32
    %c0_i32_1 = arith.constant 0 : i32
    return %c0_i32, %c0_i32_0 : i32, i32
  }
  func.func @transform_7(%arg0: i32) -> (i32, i32) {
    %c0_i32 = arith.constant 0 : i32
    %c0_i32_0 = arith.constant 0 : i32
    %c0_i32_1 = arith.constant 0 : i32
    return %c0_i32, %c0_i32_0 : i32, i32
  }
  func.func @transform_8(%arg0: i32) -> (i32, i32) {
    %c0_i32 = arith.constant 0 : i32
    %c0_i32_0 = arith.constant 0 : i32
    %c0_i32_1 = arith.constant 0 : i32
    return %c0_i32, %c0_i32_0 : i32, i32
  }
  func.func @transform_9(%arg0: i32) -> (i32, i32) {
    %c0_i32 = arith.constant 0 : i32
    %c0_i32_0 = arith.constant 0 : i32
    %c0_i32_1 = arith.constant 0 : i32
    return %c0_i32, %c0_i32_0 : i32, i32
  }
  func.func @transform_10(%arg0: i32) -> (i32, i32) {
    %c0_i32 = arith.constant 0 : i32
    %c0_i32_0 = arith.constant 0 : i32
    %c0_i32_1 = arith.constant 0 : i32
    return %c0_i32, %c0_i32_0 : i32, i32
  }
  func.func @transform_11(%arg0: i32) -> (i32, i32) {
    %c0_i32 = arith.constant 0 : i32
    %c0_i32_0 = arith.constant 0 : i32
    return %arg0, %c0_i32 : i32, i32
  }
}

module attributes {stable_mosaic.version = 11 : i64} {
  func.func @_mlp_kernel(%arg0: i32, %arg1: memref<128x128xf32, #tpu.memory_space<vmem>>, %arg2: memref<128x128xf32, #tpu.memory_space<vmem>>, %arg3: memref<1x128xf32, #tpu.memory_space<vmem>>, %arg4: memref<128x128xf32, #tpu.memory_space<vmem>>, %arg5: memref<1x128xf32, #tpu.memory_space<vmem>>, %arg6: memref<128x128xf32, #tpu.memory_space<vmem>>, %arg7: memref<1x128xf32, #tpu.memory_space<vmem>>, %arg8: memref<128x128xf32, #tpu.memory_space<vmem>>, %arg9: memref<1x128xf32, #tpu.memory_space<vmem>>, %arg10: memref<128x128xf32, #tpu.memory_space<vmem>>, %arg11: memref<1x128xf32, #tpu.memory_space<vmem>>, %arg12: memref<1x128xf32, #tpu.memory_space<vmem>>) attributes {dimension_semantics = [#tpu.dimension_semantics<parallel>], iteration_bounds = array<i64: 1>, scalar_prefetch = 0 : i64, scratch_operands = 0 : i64, tpu.core_type = #tpu.core_type<tc>, window_params = [{transform_indices = @transform_0, window_bounds = array<i64: 128, 128>}, {pipeline_mode = #tpu.pipeline_mode<synchronous>, transform_indices = @transform_1, window_bounds = array<i64: 128, 128>}, {pipeline_mode = #tpu.pipeline_mode<synchronous>, transform_indices = @transform_2, window_bounds = array<i64: 1, 128>}, {pipeline_mode = #tpu.pipeline_mode<synchronous>, transform_indices = @transform_3, window_bounds = array<i64: 128, 128>}, {pipeline_mode = #tpu.pipeline_mode<synchronous>, transform_indices = @transform_4, window_bounds = array<i64: 1, 128>}, {pipeline_mode = #tpu.pipeline_mode<synchronous>, transform_indices = @transform_5, window_bounds = array<i64: 128, 128>}, {pipeline_mode = #tpu.pipeline_mode<synchronous>, transform_indices = @transform_6, window_bounds = array<i64: 1, 128>}, {pipeline_mode = #tpu.pipeline_mode<synchronous>, transform_indices = @transform_7, window_bounds = array<i64: 128, 128>}, {pipeline_mode = #tpu.pipeline_mode<synchronous>, transform_indices = @transform_8, window_bounds = array<i64: 1, 128>}, {pipeline_mode = #tpu.pipeline_mode<synchronous>, transform_indices = @transform_9, window_bounds = array<i64: 128, 128>}, {pipeline_mode = #tpu.pipeline_mode<synchronous>, transform_indices = @transform_10, window_bounds = array<i64: 1, 128>}, {transform_indices = @transform_11, window_bounds = array<i64: 1, 128>}]} {
    %c0 = arith.constant 0 : index
    %c0_0 = arith.constant 0 : index
    %0 = vector.load %arg1[%c0, %c0_0] : memref<128x128xf32, #tpu.memory_space<vmem>>, vector<128x128xf32>
    %c0_1 = arith.constant 0 : index
    %c0_2 = arith.constant 0 : index
    %1 = vector.load %arg2[%c0_1, %c0_2] : memref<128x128xf32, #tpu.memory_space<vmem>>, vector<128x128xf32>
    %cst = arith.constant dense<0.000000e+00> : vector<128x128xf32>
    %2 = tpu.matmul %0, %1, %cst {dimension_numbers = #tpu.dot_dimension_numbers<[1], [0], [0], [1], [0, 0, 1, 1], [], []>} : vector<128x128xf32>, vector<128x128xf32>, vector<128x128xf32> -> vector<128x128xf32>
    %c0_3 = arith.constant 0 : index
    %c0_4 = arith.constant 0 : index
    %3 = vector.load %arg3[%c0_3, %c0_4] : memref<1x128xf32, #tpu.memory_space<vmem>>, vector<1x128xf32>
    %4 = vector.broadcast %3 : vector<1x128xf32> to vector<128x128xf32>
    %5 = arith.addf %2, %4 : vector<128x128xf32>
    %cst_5 = arith.constant 0.000000e+00 : f32
    %6 = vector.broadcast %cst_5 : f32 to vector<128x128xf32>
    %7 = arith.maximumf %5, %6 : vector<128x128xf32>
    %c0_6 = arith.constant 0 : index
    %c0_7 = arith.constant 0 : index
    %8 = vector.load %arg4[%c0_6, %c0_7] : memref<128x128xf32, #tpu.memory_space<vmem>>, vector<128x128xf32>
    %cst_8 = arith.constant dense<0.000000e+00> : vector<128x128xf32>
    %9 = tpu.matmul %7, %8, %cst_8 {dimension_numbers = #tpu.dot_dimension_numbers<[1], [0], [0], [1], [0, 0, 1, 1], [], []>} : vector<128x128xf32>, vector<128x128xf32>, vector<128x128xf32> -> vector<128x128xf32>
    %c0_9 = arith.constant 0 : index
    %c0_10 = arith.constant 0 : index
    %10 = vector.load %arg5[%c0_9, %c0_10] : memref<1x128xf32, #tpu.memory_space<vmem>>, vector<1x128xf32>
    %11 = vector.broadcast %10 : vector<1x128xf32> to vector<128x128xf32>
    %12 = arith.addf %9, %11 : vector<128x128xf32>
    %cst_11 = arith.constant 0.000000e+00 : f32
    %13 = vector.broadcast %cst_11 : f32 to vector<128x128xf32>
    %14 = arith.maximumf %12, %13 : vector<128x128xf32>
    %c0_12 = arith.constant 0 : index
    %c0_13 = arith.constant 0 : index
    %15 = vector.load %arg6[%c0_12, %c0_13] : memref<128x128xf32, #tpu.memory_space<vmem>>, vector<128x128xf32>
    %cst_14 = arith.constant dense<0.000000e+00> : vector<128x128xf32>
    %16 = tpu.matmul %14, %15, %cst_14 {dimension_numbers = #tpu.dot_dimension_numbers<[1], [0], [0], [1], [0, 0, 1, 1], [], []>} : vector<128x128xf32>, vector<128x128xf32>, vector<128x128xf32> -> vector<128x128xf32>
    %c0_15 = arith.constant 0 : index
    %c0_16 = arith.constant 0 : index
    %17 = vector.load %arg7[%c0_15, %c0_16] : memref<1x128xf32, #tpu.memory_space<vmem>>, vector<1x128xf32>
    %18 = vector.broadcast %17 : vector<1x128xf32> to vector<128x128xf32>
    %19 = arith.addf %16, %18 : vector<128x128xf32>
    %cst_17 = arith.constant 0.000000e+00 : f32
    %20 = vector.broadcast %cst_17 : f32 to vector<128x128xf32>
    %21 = arith.maximumf %19, %20 : vector<128x128xf32>
    %c0_18 = arith.constant 0 : index
    %c0_19 = arith.constant 0 : index
    %22 = vector.load %arg8[%c0_18, %c0_19] : memref<128x128xf32, #tpu.memory_space<vmem>>, vector<128x128xf32>
    %cst_20 = arith.constant dense<0.000000e+00> : vector<128x128xf32>
    %23 = tpu.matmul %21, %22, %cst_20 {dimension_numbers = #tpu.dot_dimension_numbers<[1], [0], [0], [1], [0, 0, 1, 1], [], []>} : vector<128x128xf32>, vector<128x128xf32>, vector<128x128xf32> -> vector<128x128xf32>
    %c0_21 = arith.constant 0 : index
    %c0_22 = arith.constant 0 : index
    %24 = vector.load %arg9[%c0_21, %c0_22] : memref<1x128xf32, #tpu.memory_space<vmem>>, vector<1x128xf32>
    %25 = vector.broadcast %24 : vector<1x128xf32> to vector<128x128xf32>
    %26 = arith.addf %23, %25 : vector<128x128xf32>
    %cst_23 = arith.constant 0.000000e+00 : f32
    %27 = vector.broadcast %cst_23 : f32 to vector<128x128xf32>
    %28 = arith.maximumf %26, %27 : vector<128x128xf32>
    %c0_24 = arith.constant 0 : index
    %c0_25 = arith.constant 0 : index
    %29 = vector.load %arg10[%c0_24, %c0_25] : memref<128x128xf32, #tpu.memory_space<vmem>>, vector<128x128xf32>
    %cst_26 = arith.constant dense<0.000000e+00> : vector<128x128xf32>
    %30 = tpu.matmul %28, %29, %cst_26 {dimension_numbers = #tpu.dot_dimension_numbers<[1], [0], [0], [1], [0, 0, 1, 1], [], []>} : vector<128x128xf32>, vector<128x128xf32>, vector<128x128xf32> -> vector<128x128xf32>
    %c0_27 = arith.constant 0 : index
    %c0_28 = arith.constant 0 : index
    %31 = vector.load %arg11[%c0_27, %c0_28] : memref<1x128xf32, #tpu.memory_space<vmem>>, vector<1x128xf32>
    %32 = vector.broadcast %31 : vector<1x128xf32> to vector<128x128xf32>
    %33 = arith.addf %30, %32 : vector<128x128xf32>
    %34 = tpu.transpose %33, [1, 0] : vector<128x128xf32> -> vector<128x128xf32>
    %35 = vector.extract_strided_slice %34 {offsets = [0, 0], sizes = [1, 128], strides = [1, 1]} : vector<128x128xf32> to vector<1x128xf32>
    %c0_29 = arith.constant 0 : index
    %c0_30 = arith.constant 0 : index
    %36 = vector.load %arg12[%c0_29, %c0_30] : memref<1x128xf32, #tpu.memory_space<vmem>>, vector<1x128xf32>
    tpu.vector_store %arg12[%c0_29, %c0_30], %35 {strides = array<i32>} : memref<1x128xf32, #tpu.memory_space<vmem>>, vector<1x128xf32>,
    return
  }
  func.func @transform_0(%arg0: i32) -> (i32, i32) {
    %c0_i32 = arith.constant 0 : i32
    %c0_i32_0 = arith.constant 0 : i32
    return %arg0, %c0_i32 : i32, i32
  }
  func.func @transform_1(%arg0: i32) -> (i32, i32) {
    %c0_i32 = arith.constant 0 : i32
    %c0_i32_0 = arith.constant 0 : i32
    %c0_i32_1 = arith.constant 0 : i32
    return %c0_i32, %c0_i32_0 : i32, i32
  }
  func.func @transform_2(%arg0: i32) -> (i32, i32) {
    %c0_i32 = arith.constant 0 : i32
    %c0_i32_0 = arith.constant 0 : i32
    %c0_i32_1 = arith.constant 0 : i32
    return %c0_i32, %c0_i32_0 : i32, i32
  }
  func.func @transform_3(%arg0: i32) -> (i32, i32) {
    %c0_i32 = arith.constant 0 : i32
    %c0_i32_0 = arith.constant 0 : i32
    %c0_i32_1 = arith.constant 0 : i32
    return %c0_i32, %c0_i32_0 : i32, i32
  }
  func.func @transform_4(%arg0: i32) -> (i32, i32) {
    %c0_i32 = arith.constant 0 : i32
    %c0_i32_0 = arith.constant 0 : i32
    %c0_i32_1 = arith.constant 0 : i32
    return %c0_i32, %c0_i32_0 : i32, i32
  }
  func.func @transform_5(%arg0: i32) -> (i32, i32) {
    %c0_i32 = arith.constant 0 : i32
    %c0_i32_0 = arith.constant 0 : i32
    %c0_i32_1 = arith.constant 0 : i32
    return %c0_i32, %c0_i32_0 : i32, i32
  }
  func.func @transform_6(%arg0: i32) -> (i32, i32) {
    %c0_i32 = arith.constant 0 : i32
    %c0_i32_0 = arith.constant 0 : i32
    %c0_i32_1 = arith.constant 0 : i32
    return %c0_i32, %c0_i32_0 : i32, i32
  }
  func.func @transform_7(%arg0: i32) -> (i32, i32) {
    %c0_i32 = arith.constant 0 : i32
    %c0_i32_0 = arith.constant 0 : i32
    %c0_i32_1 = arith.constant 0 : i32
    return %c0_i32, %c0_i32_0 : i32, i32
  }
  func.func @transform_8(%arg0: i32) -> (i32, i32) {
    %c0_i32 = arith.constant 0 : i32
    %c0_i32_0 = arith.constant 0 : i32
    %c0_i32_1 = arith.constant 0 : i32
    return %c0_i32, %c0_i32_0 : i32, i32
  }
  func.func @transform_9(%arg0: i32) -> (i32, i32) {
    %c0_i32 = arith.constant 0 : i32
    %c0_i32_0 = arith.constant 0 : i32
    %c0_i32_1 = arith.constant 0 : i32
    return %c0_i32, %c0_i32_0 : i32, i32
  }
  func.func @transform_10(%arg0: i32) -> (i32, i32) {
    %c0_i32 = arith.constant 0 : i32
    %c0_i32_0 = arith.constant 0 : i32
    %c0_i32_1 = arith.constant 0 : i32
    return %c0_i32, %c0_i32_0 : i32, i32
  }
  func.func @transform_11(%arg0: i32) -> (i32, i32) {
    %c0_i32 = arith.constant 0 : i32
    %c0_i32_0 = arith.constant 0 : i32
    return %arg0, %c0_i32 : i32, i32
  }
}

</mosaic_0001>

<bundles_post_ra>
// kernel: tpu_custom_call.1
= control target key start
LH: loop header
LB: loop body
LE: loop exit
PB: predicated region body
PF: predicated region fallthrough
CT: control target
= control target key end

     0   :  { %16 = vsyncpa [#allocation3], 0  ;;  %s2135_s0 = inlined_call_operand.hbm [shape: f32[128,128], index: 0, kind: input, shape index: {}]   ;;  %s2136_s1 = inlined_call_operand.hbm [shape: f32[128,128], index: 1, kind: input, shape index: {}]   ;;  %s2137_s2 = inlined_call_operand.vmem [shape: f32[1,128], index: 2, kind: input, shape index: {}]   ;;  %s2138_s3 = inlined_call_operand.hbm [shape: f32[128,128], index: 3, kind: input, shape index: {}]   ;;  %s2139_s4 = inlined_call_operand.vmem [shape: f32[1,128], index: 4, kind: input, shape index: {}]   ;;  %s2140_s5 = inlined_call_operand.hbm [shape: f32[128,128], index: 5, kind: input, shape index: {}]   ;;  %s2141_s6 = inlined_call_operand.vmem [shape: f32[1,128], index: 6, kind: input, shape index: {}]   ;;  %s2142_s7 = inlined_call_operand.hbm [shape: f32[128,128], index: 7, kind: input, shape index: {}]   ;;  %s2143_s8 = inlined_call_operand.vmem [shape: f32[1,128], index: 8, kind: input, shape index: {}]   ;;  %s2144_s9 = inlined_call_operand.hbm [shape: f32[128,128], index: 9, kind: input, shape index: {}]   ;;  %s2145_s10 = inlined_call_operand.vmem [shape: f32[1,128], index: 10, kind: input, shape index: {}]   ;;  %s2146_s11 = inlined_call_operand.hbm [shape: f32[1,128], index: 11, kind: output, shape index: {}]  }
   0x1   :  { %17 = vsyncpa [#allocation6], 0 }
   0x2   :  { %18 = vsyncpa [#allocation9], 0 }
   0x3   :  { %19 = vsyncpa [#allocation12], 0 }
   0x4   :  { %20 = vsyncpa [#allocation4], 0  ;;  %s1886_s17 = smov [#allocation5]   ;;  %s1887_s19 = smov [#allocation8]  }
   0x5   :  { %s38_s18 = sshll.u32 %s1886_s17, 4  ;;  %s66_s20 = sshll.u32 %s1887_s19, 4  ;;  %s39_s18 = int_to_ptr.vmem [resolvable:$true] %s38_s18  ;;  %s1955_s20 = int_to_ptr.vmem [resolvable:$true] %s66_s20 }
   0x6   :  { %s1722_s23 = scalar_lea.hbm %s2136_s1, 2048 }
   0x7   :  { %p1723_p0 = scmp.ne.s32.totalorder %s2136_s1, %s1722_s23  ;;  %p1726_p1 = scmp.lt.u32.totalorder %s1722_s23, %s2136_s1 }
   0x9   :  { %p1728_p2 = pnand %p1726_p1, %p1723_p0 }
   0xb   :  { %1731 = shalt.err (!%p1728_p2)
}
   0xc   :  { %s1732_s28 = scalar_lea.vmem %s39_s18, 2048  ;;  %p1737_p4 = scmp.lt.s32.totalorder %s39_s18, %s39_s18 }
   0xd   :  { %p1733_p3 = scmp.ne.s32.totalorder %s39_s18, %s1732_s28  ;;  %p1738_p5 = scmp.lt.s32.totalorder %s1732_s28, %s1732_s28 }
   0xf   :  { %p1739_p6 = por %p1738_p5, %p1737_p4 }
  0x11   :  { %p1740_p7 = pnand %p1739_p6, %p1733_p3 }
  0x13   :  { %1743 = shalt.err (!%p1740_p7)
}
  0x14   :  { %s1888_s29 = smov 128   ;;  %s1889_s30 = smov 8  }
  0x15   :  { %44 = dma.hbm_to_vmem [thread:$0]  %s2136_s1, 2048, %s39_s18, [#allocation6], %s1888_s29, %s1888_s29, %s1889_s30  }
  0x16   :  { %s1744_s16 = scalar_lea.hbm %s2140_s5, 2048 }
  0x17   :  { %p1745_p8 = scmp.ne.s32.totalorder %s2140_s5, %s1744_s16  ;;  %p1748_p9 = scmp.lt.u32.totalorder %s1744_s16, %s2140_s5 }
  0x19   :  { %p1750_p10 = pnand %p1748_p9, %p1745_p8 }
  0x1b   :  { %1753 = shalt.err (!%p1750_p10)
}
  0x1c   :  { %s1754_s23 = scalar_lea.vmem %s1955_s20, 2048  ;;  %p1759_p12 = scmp.lt.s32.totalorder %s1955_s20, %s1955_s20 }
  0x1d   :  { %p1755_p11 = scmp.ne.s32.totalorder %s1955_s20, %s1754_s23  ;;  %p1760_p13 = scmp.lt.s32.totalorder %s1754_s23, %s1754_s23 }
  0x1f   :  { %p1761_p0 = por %p1760_p13, %p1759_p12 }
  0x21   :  { %p1762_p1 = pnand %p1761_p0, %p1755_p11 }
  0x23   :  { %1765 = shalt.err (!%p1762_p1)
}
  0x24   :  { %72 = dma.hbm_to_vmem [thread:$0]  %s2140_s5, 2048, %s1955_s20, [#allocation9], %s1888_s29, %s1888_s29, %s1889_s30  }
  0x25   :  { %s1890_s24 = smov [#allocation2]   ;;  %s1891_s26 = smov [#allocation7]  }
  0x26   :  { %s26_s25 = sshll.u32 %s1890_s24, 4  ;;  %s52_s27 = sshll.u32 %s1891_s26, 4  ;;  %s27_s25 = int_to_ptr.vmem [resolvable:$true] %s26_s25  ;;  %s1992_s27 = int_to_ptr.vmem [resolvable:$true] %s52_s27 }
  0x27   :  { %s1766_s13 = scalar_lea.hbm %s2135_s0, 2048 }
  0x28   :  { %p1767_p2 = scmp.ne.s32.totalorder %s2135_s0, %s1766_s13  ;;  %p1770_p3 = scmp.lt.u32.totalorder %s1766_s13, %s2135_s0 }
  0x2a   :  { %p1772_p4 = pnand %p1770_p3, %p1767_p2 }
  0x2c   :  { %1775 = shalt.err (!%p1772_p4)
}
  0x2d   :  { %s1776_s5 = scalar_lea.vmem %s27_s25, 2048  ;;  %p1781_p6 = scmp.lt.s32.totalorder %s27_s25, %s27_s25 }
  0x2e   :  { %p1777_p5 = scmp.ne.s32.totalorder %s27_s25, %s1776_s5  ;;  %p1782_p7 = scmp.lt.s32.totalorder %s1776_s5, %s1776_s5 }
  0x30   :  { %p1783_p8 = por %p1782_p7, %p1781_p6 }
  0x32   :  { %p1784_p9 = pnand %p1783_p8, %p1777_p5 }
  0x34   :  { %1787 = shalt.err (!%p1784_p9)
}
  0x35   :  { %32 = dma.hbm_to_vmem [thread:$0]  %s2135_s0, 2048, %s27_s25, [#allocation3], %s1888_s29, %s1888_s29, %s1889_s30  }
  0x36   :  { %s1788_s23 = scalar_lea.hbm %s2138_s3, 2048 }
  0x37   :  { %p1789_p10 = scmp.ne.s32.totalorder %s2138_s3, %s1788_s23  ;;  %p1792_p11 = scmp.lt.u32.totalorder %s1788_s23, %s2138_s3 }
  0x39   :  { %p1794_p12 = pnand %p1792_p11, %p1789_p10 }
  0x3b   :  { %1797 = shalt.err (!%p1794_p12)
}
  0x3c   :  { %s1798_s28 = scalar_lea.vmem %s1992_s27, 2048  ;;  %p1803_p0 = scmp.lt.s32.totalorder %s1992_s27, %s1992_s27 }
  0x3d   :  { %p1799_p13 = scmp.ne.s32.totalorder %s1992_s27, %s1798_s28  ;;  %p1804_p1 = scmp.lt.s32.totalorder %s1798_s28, %s1798_s28 }
  0x3f   :  { %p1805_p2 = por %p1804_p1, %p1803_p0 }
  0x41   :  { %p1806_p3 = pnand %p1805_p2, %p1799_p13 }
  0x43   :  { %1809 = shalt.err (!%p1806_p3)
}
  0x44   :  { %58 = dma.hbm_to_vmem [thread:$0]  %s2138_s3, 2048, %s1992_s27, [#allocation6], %s1888_s29, %s1888_s29, %s1889_s30  }
  0x45   :  { %s1892_s12 = smov [#allocation10]   ;;  %s1893_s14 = smov [#allocation11]  }
  0x46   :  { %s80_s13 = sshll.u32 %s1892_s12, 4  ;;  %s94_s15 = sshll.u32 %s1893_s14, 4  ;;  %s81_s13 = int_to_ptr.vmem [resolvable:$true] %s80_s13  ;;  %s2029_s15 = int_to_ptr.vmem [resolvable:$true] %s94_s15 }
  0x47   :  { %s1810_s5 = scalar_lea.hbm %s2142_s7, 2048 }
  0x48   :  { %p1811_p4 = scmp.ne.s32.totalorder %s2142_s7, %s1810_s5  ;;  %p1814_p5 = scmp.lt.u32.totalorder %s1810_s5, %s2142_s7 }
  0x4a   :  { %p1816_p6 = pnand %p1814_p5, %p1811_p4 }
  0x4c   :  { %1819 = shalt.err (!%p1816_p6)
}
  0x4d   :  { %s1820_s3 = scalar_lea.vmem %s81_s13, 2048  ;;  %p1825_p8 = scmp.lt.s32.totalorder %s81_s13, %s81_s13 }
  0x4e   :  { %p1821_p7 = scmp.ne.s32.totalorder %s81_s13, %s1820_s3  ;;  %p1826_p9 = scmp.lt.s32.totalorder %s1820_s3, %s1820_s3 }
  0x50   :  { %p1827_p10 = por %p1826_p9, %p1825_p8 }
  0x52   :  { %p1828_p11 = pnand %p1827_p10, %p1821_p7 }
  0x54   :  { %1831 = shalt.err (!%p1828_p11)
}
  0x55   :  { %86 = dma.hbm_to_vmem [thread:$0]  %s2142_s7, 2048, %s81_s13, [#allocation9], %s1888_s29, %s1888_s29, %s1889_s30  }
  0x56   :  { %s1832_s24 = scalar_lea.hbm %s2144_s9, 2048 }
  0x57   :  { %p1833_p12 = scmp.ne.s32.totalorder %s2144_s9, %s1832_s24  ;;  %p1836_p13 = scmp.lt.u32.totalorder %s1832_s24, %s2144_s9 }
  0x59   :  { %p1838_p0 = pnand %p1836_p13, %p1833_p12 }
  0x5b   :  { %1841 = shalt.err (!%p1838_p0)
}
  0x5c   :  { %s1842_s12 = scalar_lea.vmem %s2029_s15, 2048  ;;  %p1847_p2 = scmp.lt.s32.totalorder %s2029_s15, %s2029_s15 }
  0x5d   :  { %p1843_p1 = scmp.ne.s32.totalorder %s2029_s15, %s1842_s12  ;;  %p1848_p3 = scmp.lt.s32.totalorder %s1842_s12, %s1842_s12 }
  0x5f   :  { %p1849_p4 = por %p1848_p3, %p1847_p2 }
  0x61   :  { %p1850_p5 = pnand %p1849_p4, %p1843_p1 }
  0x63   :  { %1853 = shalt.err (!%p1850_p5)
}
  0x64   :  { %100 = dma.hbm_to_vmem [thread:$0]  %s2144_s9, 2048, %s2029_s15, [#allocation12], %s1888_s29, %s1888_s29, %s1889_s30  }
  0x65   :  { %1876 = dma.done.wait [#allocation3], 2048  }
  0x66   :  { %1877 = vsyncadd [#allocation3], 4294965248 }
  0x67   :  { %1878 = dma.done.wait [#allocation6], 4096  }
  0x68   :  { %1879 = vsyncadd [#allocation6], 4294963200 }
  0x69   :  { %1880 = dma.done.wait [#allocation9], 4096  }
  0x6a   :  { %1881 = vsyncadd [#allocation9], 4294963200 }
  0x6b   :  { %1882 = dma.done.wait [#allocation12], 2048  }
  0x6c   :  { %1883 = vsyncadd [#allocation12], 4294965248  ;;  %v137_v0 = vld [vmem:[#allocation5] sm:$0xff]  ;;  %v138_v1 = vld [vmem:[#allocation5 + $0x8] sm:$0xff] }
  0x6d   :  { %v139_v2 = vld [vmem:[#allocation5 + $0x10] sm:$0xff]  ;;  %v1537_v3 = vpack.c.bf16 %v138_v1, %v137_v0  ;;  %v140_v4 = vld [vmem:[#allocation5 + $0x18] sm:$0xff]  ;;  %v141_v6 = vld [vmem:[#allocation5 + $0x20] sm:$0xff] }
  0x6e   :  { %v1541_v5 = vpack.c.bf16 %v140_v4, %v139_v2  ;;  %v142_v7 = vld [vmem:[#allocation5 + $0x28] sm:$0xff]  ;;  %v121_v9 = vld [vmem:[#allocation2] sm:$0xff]  ;;  %v143_v10 = vld [vmem:[#allocation5 + $0x30] sm:$0xff] }
  0x6f   :  { %1538 = vmatprep.subr.bf16.mxu0 %v1537_v3  ;;  %v1545_v8 = vpack.c.bf16 %v142_v7, %v141_v6  ;;  %v144_v11 = vld [vmem:[#allocation5 + $0x38] sm:$0xff]  ;;  %1289 = vmatprep.mubr.f32.mxu0 %v121_v9  ;;  %v145_v13 = vld [vmem:[#allocation5 + $0x40] sm:$0xff]  ;;  %v146_v14 = vld [vmem:[#allocation5 + $0x48] sm:$0xff] }
  0x70   :  { %1540 = vmatpush3.bf16.msra.mxu0 %v1537_v3  ;;  %v1549_v12 = vpack.c.bf16 %v144_v11, %v143_v10  ;;  %v321_v15 = vld [vmem:[#allocation7] sm:$0xff]  ;;  %v322_v16 = vld [vmem:[#allocation7 + $0x8] sm:$0xff]  ;;  %v323_v17 = vld [vmem:[#allocation7 + $0x10] sm:$0xff]  ;;  %v1553_v21 = vpack.c.bf16 %v146_v14, %v145_v13 }
  0x71   :  { %1542 = vmatprep.subr.bf16.mxu0 %v1541_v5  ;;  %v324_v18 = vld [vmem:[#allocation7 + $0x18] sm:$0xff]  ;;  %v1569_v19 = vpack.c.bf16 %v322_v16, %v321_v15  ;;  %v325_v22 = vld [vmem:[#allocation7 + $0x20] sm:$0xff]  ;;  %v326_v23 = vld [vmem:[#allocation7 + $0x28] sm:$0xff] }
  0x72   :  { %v1573_v20 = vpack.c.bf16 %v324_v18, %v323_v17  ;;  %v147_v24 = vld [vmem:[#allocation5 + $0x50] sm:$0xff]  ;;  %v148_v25 = vld [vmem:[#allocation5 + $0x58] sm:$0xff]  ;;  %v1577_v26 = vpack.c.bf16 %v326_v23, %v325_v22  ;;  %v149_v30 = vld [vmem:[#allocation5 + $0x60] sm:$0xff] }
  0x73   :  { %1570 = vmatprep.subr.bf16.mxu1 %v1569_v19  ;;  %v1557_v27 = vpack.c.bf16 %v148_v25, %v147_v24  ;;  %v327_v28 = vld [vmem:[#allocation7 + $0x30] sm:$0xff]  ;;  %v328_v29 = vld [vmem:[#allocation7 + $0x38] sm:$0xff]  ;;  %v150_v31 = vld [vmem:[#allocation5 + $0x68] sm:$0xff] }
  0x74   :  { %1544 = vmatpush3.bf16.msra.mxu0 %v1541_v5  ;;  %1572 = vmatpush3.bf16.msra.mxu1 %v1569_v19  ;;  %v1581_v32 = vpack.c.bf16 %v328_v29, %v327_v28  ;;  %v1561_v33 = vpack.c.bf16 %v150_v31, %v149_v30  ;;  %v329_v34 = vld [vmem:[#allocation7 + $0x40] sm:$0xff]  ;;  %v330_v35 = vld [vmem:[#allocation7 + $0x48] sm:$0xff]  ;;  %v151_v36 = vld [vmem:[#allocation5 + $0x70] sm:$0xff] }
  0x75   :  { %1546 = vmatprep.subr.bf16.mxu0 %v1545_v8  ;;  %1574 = vmatprep.subr.bf16.mxu1 %v1573_v20  ;;  %v152_v37 = vld [vmem:[#allocation5 + $0x78] sm:$0xff]  ;;  %v1585_v38 = vpack.c.bf16 %v330_v35, %v329_v34  ;;  %v331_v40 = vld [vmem:[#allocation7 + $0x50] sm:$0xff]  ;;  %v333_v43 = vld [vmem:[#allocation7 + $0x60] sm:$0xff] }
  0x76   :  { %v1565_v39 = vpack.c.bf16 %v152_v37, %v151_v36  ;;  %v332_v41 = vld [vmem:[#allocation7 + $0x58] sm:$0xff]  ;;  %v334_v44 = vld [vmem:[#allocation7 + $0x68] sm:$0xff]  ;;  %v123_v47 = vld [vmem:[#allocation2 + $0x10] sm:$0xff] }
  0x77   :  { %v1589_v42 = vpack.c.bf16 %v332_v41, %v331_v40  ;;  %v122_v45 = vld [vmem:[#allocation2 + $0x8] sm:$0xff]  ;;  %v1593_v46 = vpack.c.bf16 %v334_v44, %v333_v43  ;;  %v124_v48 = vld [vmem:[#allocation2 + $0x18] sm:$0xff]  ;;  %v125_v49 = vld [vmem:[#allocation2 + $0x20] sm:$0xff] }
  0x78   :  { %1548 = vmatpush3.bf16.msra.mxu0 %v1545_v8  ;;  %1576 = vmatpush3.bf16.msra.mxu1 %v1573_v20  ;;  %v126_v50 = vld [vmem:[#allocation2 + $0x28] sm:$0xff]  ;;  %v127_v51 = vld [vmem:[#allocation2 + $0x30] sm:$0xff]  ;;  %v128_v52 = vld [vmem:[#allocation2 + $0x38] sm:$0xff] }
  0x79   :  { %1550 = vmatprep.subr.bf16.mxu0 %v1549_v12  ;;  %1578 = vmatprep.subr.bf16.mxu1 %v1577_v26  ;;  %v129_v53 = vld [vmem:[#allocation2 + $0x40] sm:$0xff]  ;;  %v130_v54 = vld [vmem:[#allocation2 + $0x48] sm:$0xff]  ;;  %v131_v55 = vld [vmem:[#allocation2 + $0x50] sm:$0xff] }
  0x7a   :  { %v132_v56 = vld [vmem:[#allocation2 + $0x58] sm:$0xff]  ;;  %v133_v57 = vld [vmem:[#allocation2 + $0x60] sm:$0xff]  ;;  %v134_v58 = vld [vmem:[#allocation2 + $0x68] sm:$0xff] }
  0x7b   :  { %v135_v59 = vld [vmem:[#allocation2 + $0x70] sm:$0xff]  ;;  %v136_v60 = vld [vmem:[#allocation2 + $0x78] sm:$0xff]  ;;  %v505_v0 = vld [vmem:[#allocation8] sm:$0xff] }
  0x7c   :  { %1552 = vmatpush3.bf16.msra.mxu0 %v1549_v12  ;;  %1580 = vmatpush3.bf16.msra.mxu1 %v1577_v26  ;;  %v335_v61 = vld [vmem:[#allocation7 + $0x70] sm:$0xff]  ;;  %v336_v62 = vld [vmem:[#allocation7 + $0x78] sm:$0xff]  ;;  %v506_v1 = vld [vmem:[#allocation8 + $0x8] sm:$0xff] }
  0x7d   :  { %1554 = vmatprep.subr.bf16.mxu0 %v1553_v21  ;;  %1582 = vmatprep.subr.bf16.mxu1 %v1581_v32  ;;  %v1597_v63 = vpack.c.bf16 %v336_v62, %v335_v61  ;;  %v507_v2 = vld [vmem:[#allocation8 + $0x10] sm:$0xff]  ;;  %v1601_v3 = vpack.c.bf16 %v506_v1, %v505_v0  ;;  %v508_v4 = vld [vmem:[#allocation8 + $0x18] sm:$0xff]  ;;  %v509_v6 = vld [vmem:[#allocation8 + $0x20] sm:$0xff] }
  0x7e   :  { %v1605_v5 = vpack.c.bf16 %v508_v4, %v507_v2  ;;  %v510_v7 = vld [vmem:[#allocation8 + $0x28] sm:$0xff]  ;;  %v511_v9 = vld [vmem:[#allocation8 + $0x30] sm:$0xff]  ;;  %v512_v10 = vld [vmem:[#allocation8 + $0x38] sm:$0xff] }
  0x7f   :  { %v1609_v8 = vpack.c.bf16 %v510_v7, %v509_v6  ;;  %v1613_v11 = vpack.c.bf16 %v512_v10, %v511_v9  ;;  %v513_v12 = vld [vmem:[#allocation8 + $0x40] sm:$0xff]  ;;  %v514_v13 = vld [vmem:[#allocation8 + $0x48] sm:$0xff]  ;;  %v515_v15 = vld [vmem:[#allocation8 + $0x50] sm:$0xff] }
  0x80   :  { %1556 = vmatpush3.bf16.msra.mxu0 %v1553_v21  ;;  %1584 = vmatpush3.bf16.msra.mxu1 %v1581_v32  ;;  %v1617_v14 = vpack.c.bf16 %v514_v13, %v513_v12  ;;  %v516_v16 = vld [vmem:[#allocation8 + $0x58] sm:$0xff]  ;;  %v517_v18 = vld [vmem:[#allocation8 + $0x60] sm:$0xff]  ;;  %v518_v19 = vld [vmem:[#allocation8 + $0x68] sm:$0xff] }
  0x81   :  { %1558 = vmatprep.subr.bf16.mxu0 %v1557_v27  ;;  %1586 = vmatprep.subr.bf16.mxu1 %v1585_v38  ;;  %v1621_v17 = vpack.c.bf16 %v516_v16, %v515_v15  ;;  %v1625_v20 = vpack.c.bf16 %v518_v19, %v517_v18  ;;  %v1092_v21 = vld [vmem:[%s2137_s2] ss:$0 sm:$0xff]  ;;  %v519_v6 = vld [vmem:[#allocation8 + $0x70] sm:$0xff]  ;;  %v520_v7 = vld [vmem:[#allocation8 + $0x78] sm:$0xff] }
  0x82   :  { %v689_v9 = vld [vmem:[#allocation10] sm:$0xff]  ;;  %v690_v10 = vld [vmem:[#allocation10 + $0x8] sm:$0xff]  ;;  %v692_v13 = vld [vmem:[#allocation10 + $0x18] sm:$0xff] }
  0x83   :  { %v1633_v12 = vpack.c.bf16 %v690_v10, %v689_v9  ;;  %v693_v15 = vld [vmem:[#allocation10 + $0x20] sm:$0xff]  ;;  %v694_v16 = vld [vmem:[#allocation10 + $0x28] sm:$0xff]  ;;  %v695_v18 = vld [vmem:[#allocation10 + $0x30] sm:$0xff] }
  0x84   :  { %1560 = vmatpush3.bf16.msra.mxu0 %v1557_v27  ;;  %1588 = vmatpush3.bf16.msra.mxu1 %v1585_v38  ;;  %v696_v19 = vld [vmem:[#allocation10 + $0x38] sm:$0xff] }
  0x85   :  { %1562 = vmatprep.subr.bf16.mxu0 %v1561_v33  ;;  %1590 = vmatprep.subr.bf16.mxu1 %v1589_v42 }
  0x88   :  { %1564 = vmatpush3.bf16.msra.mxu0 %v1561_v33  ;;  %1592 = vmatpush3.bf16.msra.mxu1 %v1589_v42 }
  0x89   :  { %1566 = vmatprep.subr.bf16.mxu0 %v1565_v39  ;;  %1594 = vmatprep.subr.bf16.mxu1 %v1593_v46 }
  0x8c   :  { %1568 = vmatpush3.bf16.msra.mxu0 %v1565_v39  ;;  %1596 = vmatpush3.bf16.msra.mxu1 %v1593_v46 }
  0x8d   :  { %1598 = vmatprep.subr.bf16.mxu1 %v1597_v63  ;;  %1602 = vmatprep.subr.bf16.mxu0 %v1601_v3 }
  0x8f   :  { %1290 = vmatmul.mubr.f32.vlgmr.msra.gmra.mrb[0].mxu0 %v122_v45 }
  0x90   :  { %1292 = vmatprep.mubr.f32.mxu0 %v123_v47  ;;  %1600 = vmatpush3.bf16.msra.mxu1 %v1597_v63 }
  0x91   :  { %1604 = vmatpush3.bf16.msra.mxu0 %v1601_v3  ;;  %1634 = vmatprep.subr.bf16.mxu1 %v1633_v12 }
  0x92   :  { %1606 = vmatprep.subr.bf16.mxu0 %v1605_v5 }
  0x93   :  { %1293 = vmatmul.mubr.f32.gmra.mrb[2].mxu0 %v124_v48 }
  0x94   :  { %1295 = vmatprep.mubr.f32.mxu0 %v125_v49 }
  0x95   :  { %1608 = vmatpush3.bf16.msra.mxu0 %v1605_v5 }
  0x96   :  { %1610 = vmatprep.subr.bf16.mxu0 %v1609_v8 }
  0x97   :  { %1296 = vmatmul.mubr.f32.gmra.mrb[4].mxu0 %v126_v50 }
  0x98   :  { %1298 = vmatprep.mubr.f32.mxu0 %v127_v51 }
  0x99   :  { %1612 = vmatpush3.bf16.msra.mxu0 %v1609_v8  ;;  %v1629_v8 = vpack.c.bf16 %v520_v7, %v519_v6 }
  0x9a   :  { %1614 = vmatprep.subr.bf16.mxu0 %v1613_v11 }
  0x9b   :  { %1299 = vmatmul.mubr.f32.gmra.mrb[6].mxu0 %v128_v52 }
  0x9c   :  { %1301 = vmatprep.mubr.f32.mxu0 %v129_v53 }
  0x9d   :  { %1616 = vmatpush3.bf16.msra.mxu0 %v1613_v11  ;;  %v691_v11 = vld [vmem:[#allocation10 + $0x10] sm:$0xff] }
  0x9e   :  { %1618 = vmatprep.subr.bf16.mxu0 %v1617_v14 }
  0x9f   :  { %1302 = vmatmul.mubr.f32.gmra.mrb[8].mxu0 %v130_v54 }
  0xa0   :  { %1304 = vmatprep.mubr.f32.mxu0 %v131_v55 }
  0xa1   :  { %1620 = vmatpush3.bf16.msra.mxu0 %v1617_v14  ;;  %v1637_v14 = vpack.c.bf16 %v692_v13, %v691_v11 }
  0xa2   :  { %1622 = vmatprep.subr.bf16.mxu0 %v1621_v17 }
  0xa3   :  { %1305 = vmatmul.mubr.f32.gmra.mrb[10].mxu0 %v132_v56 }
  0xa4   :  { %1307 = vmatprep.mubr.f32.mxu0 %v133_v57 }
  0xa5   :  { %1624 = vmatpush3.bf16.msra.mxu0 %v1621_v17  ;;  %v1641_v17 = vpack.c.bf16 %v694_v16, %v693_v15  ;;  %v703_v15 = vld [vmem:[#allocation10 + $0x70] sm:$0xff]  ;;  %v704_v16 = vld [vmem:[#allocation10 + $0x78] sm:$0xff] }
  0xa6   :  { %1626 = vmatprep.subr.bf16.mxu0 %v1625_v20 }
  0xa7   :  { %1308 = vmatmul.mubr.f32.gmra.mrb[12].mxu0 %v134_v58 }
  0xa8   :  { %1310 = vmatprep.mubr.f32.mxu0 %v135_v59 }
  0xa9   :  { %1628 = vmatpush3.bf16.msra.mxu0 %v1625_v20  ;;  %v1645_v20 = vpack.c.bf16 %v696_v19, %v695_v18  ;;  %v873_v18 = vld [vmem:[#allocation11] sm:$0xff]  ;;  %v874_v19 = vld [vmem:[#allocation11 + $0x8] sm:$0xff] }
  0xaa   :  { %1630 = vmatprep.subr.bf16.mxu0 %v1629_v8 }
  0xab   :  { %1311 = vmatmul.mubr.f32.gmra.mrb[14].mxu0 %v136_v60 }
  0xad   :  { %1632 = vmatpush3.bf16.msra.mxu0 %v1629_v8 }
 0x162   :  { %v1291_v22 = vpop.f32.mrb[0].mxu0 }
 0x163   :  { %v232_v23 = vadd.f32 %v1291_v22, %v1092_v21  ;;  %v226_v24 = vpop.f32.mrb[1].mxu0  ;;  %v698_v22 = vld [vmem:[#allocation10 + $0x48] sm:$0xff] }
 0x164   :  { %v227_v25 = vadd.f32 %v1092_v21, %v226_v24  ;;  %v699_v24 = vld [vmem:[#allocation10 + $0x50] sm:$0xff] }
 0x165   :  { %v306_v28 = vmax.f32 %v232_v23, 0.0 }
 0x166   :  { %v1294_v26 = vpop.f32.mrb[2].mxu0  ;;  %v305_v27 = vmax.f32 %v227_v25, 0.0  ;;  %v700_v25 = vld [vmem:[#allocation10 + $0x58] sm:$0xff] }
 0x167   :  { %v242_v29 = vadd.f32 %v1294_v26, %v1092_v21  ;;  %v236_v30 = vpop.f32.mrb[3].mxu0  ;;  %v1653_v26 = vpack.c.bf16 %v700_v25, %v699_v24  ;;  %v877_v24 = vld [vmem:[#allocation11 + $0x20] sm:$0xff]  ;;  %v878_v25 = vld [vmem:[#allocation11 + $0x28] sm:$0xff] }
 0x168   :  { %v237_v31 = vadd.f32 %v1092_v21, %v236_v30  ;;  %1345 = vmatprep.mubr.f32.mxu1 %v305_v27  ;;  %v701_v27 = vld [vmem:[#allocation10 + $0x60] sm:$0xff] }
 0x169   :  { %v308_v32 = vmax.f32 %v242_v29, 0.0  ;;  %1346 = vmatmul.mubr.f32.vlgmr.msra.gmra.mrb[0].mxu1 %v306_v28  ;;  %v702_v28 = vld [vmem:[#allocation10 + $0x68] sm:$0xff]  ;;  %v1093_v30 = vld [vmem:[%s2139_s4] ss:$0 sm:$0xff] }
 0x16a   :  { %v307_v33 = vmax.f32 %v237_v31, 0.0  ;;  %v1297_v34 = vpop.f32.mrb[4].mxu0  ;;  %1636 = vmatpush3.bf16.msra.mxu1 %v1633_v12  ;;  %v1657_v29 = vpack.c.bf16 %v702_v28, %v701_v27  ;;  %v879_v27 = vld [vmem:[#allocation11 + $0x30] sm:$0xff]  ;;  %v880_v28 = vld [vmem:[#allocation11 + $0x38] sm:$0xff] }
 0x16b   :  { %v252_v35 = vadd.f32 %v1297_v34, %v1092_v21  ;;  %v246_v36 = vpop.f32.mrb[5].mxu0  ;;  %1638 = vmatprep.subr.bf16.mxu1 %v1637_v14 }
 0x16c   :  { %v247_v37 = vadd.f32 %v1092_v21, %v246_v36  ;;  %1348 = vmatprep.mubr.f32.mxu1 %v307_v33 }
 0x16d   :  { %v310_v38 = vmax.f32 %v252_v35, 0.0  ;;  %1349 = vmatmul.mubr.f32.gmra.mrb[2].mxu1 %v308_v32 }
 0x16e   :  { %v309_v39 = vmax.f32 %v247_v37, 0.0  ;;  %v1300_v40 = vpop.f32.mrb[6].mxu0  ;;  %1640 = vmatpush3.bf16.msra.mxu1 %v1637_v14 }
 0x16f   :  { %v262_v41 = vadd.f32 %v1300_v40, %v1092_v21  ;;  %v256_v42 = vpop.f32.mrb[7].mxu0  ;;  %1642 = vmatprep.subr.bf16.mxu1 %v1641_v17 }
 0x170   :  { %1351 = vmatprep.mubr.f32.mxu1 %v309_v39  ;;  %v257_v43 = vadd.f32 %v1092_v21, %v256_v42 }
 0x171   :  { %v312_v44 = vmax.f32 %v262_v41, 0.0  ;;  %1352 = vmatmul.mubr.f32.gmra.mrb[4].mxu1 %v310_v38 }
 0x172   :  { %v311_v45 = vmax.f32 %v257_v43, 0.0  ;;  %v1303_v46 = vpop.f32.mrb[8].mxu0  ;;  %1644 = vmatpush3.bf16.msra.mxu1 %v1641_v17  ;;  %v1661_v17 = vpack.c.bf16 %v704_v16, %v703_v15 }
 0x173   :  { %v272_v47 = vadd.f32 %v1303_v46, %v1092_v21  ;;  %v266_v48 = vpop.f32.mrb[9].mxu0  ;;  %1646 = vmatprep.subr.bf16.mxu1 %v1645_v20 }
 0x174   :  { %1354 = vmatprep.mubr.f32.mxu1 %v311_v45  ;;  %v267_v49 = vadd.f32 %v1092_v21, %v266_v48 }
 0x175   :  { %1355 = vmatmul.mubr.f32.gmra.mrb[6].mxu1 %v312_v44  ;;  %v314_v50 = vmax.f32 %v272_v47, 0.0 }
 0x176   :  { %v313_v51 = vmax.f32 %v267_v49, 0.0  ;;  %v1306_v52 = vpop.f32.mrb[10].mxu0  ;;  %1648 = vmatpush3.bf16.msra.mxu1 %v1645_v20  ;;  %v875_v20 = vld [vmem:[#allocation11 + $0x10] sm:$0xff] }
 0x177   :  { %v282_v53 = vadd.f32 %v1306_v52, %v1092_v21  ;;  %v276_v54 = vpop.f32.mrb[11].mxu0 }
 0x178   :  { %1357 = vmatprep.mubr.f32.mxu1 %v313_v51  ;;  %v277_v55 = vadd.f32 %v1092_v21, %v276_v54 }
 0x179   :  { %1358 = vmatmul.mubr.f32.gmra.mrb[8].mxu1 %v314_v50  ;;  %v316_v56 = vmax.f32 %v282_v53, 0.0 }
 0x17a   :  { %v315_v57 = vmax.f32 %v277_v55, 0.0  ;;  %v1309_v58 = vpop.f32.mrb[12].mxu0 }
 0x17b   :  { %v292_v59 = vadd.f32 %v1309_v58, %v1092_v21  ;;  %v286_v60 = vpop.f32.mrb[13].mxu0 }
 0x17c   :  { %1360 = vmatprep.mubr.f32.mxu1 %v315_v57  ;;  %v287_v61 = vadd.f32 %v1092_v21, %v286_v60 }
 0x17d   :  { %1361 = vmatmul.mubr.f32.gmra.mrb[10].mxu1 %v316_v56  ;;  %v318_v62 = vmax.f32 %v292_v59, 0.0 }
 0x17e   :  { %v317_v63 = vmax.f32 %v287_v61, 0.0  ;;  %v1312_v0 = vpop.f32.mrb[14].mxu0 }
 0x17f   :  { %v302_v1 = vadd.f32 %v1312_v0, %v1092_v21  ;;  %v296_v2 = vpop.f32.mrb[15].mxu0 }
 0x180   :  { %1363 = vmatprep.mubr.f32.mxu1 %v317_v63  ;;  %v297_v3 = vadd.f32 %v1092_v21, %v296_v2  ;;  %v697_v21 = vld [vmem:[#allocation10 + $0x40] sm:$0xff] }
 0x181   :  { %1364 = vmatmul.mubr.f32.gmra.mrb[12].mxu1 %v318_v62  ;;  %v320_v4 = vmax.f32 %v302_v1, 0.0  ;;  %v1649_v23 = vpack.c.bf16 %v698_v22, %v697_v21  ;;  %v1665_v21 = vpack.c.bf16 %v874_v19, %v873_v18  ;;  %v876_v22 = vld [vmem:[#allocation11 + $0x18] sm:$0xff] }
 0x182   :  { %v319_v5 = vmax.f32 %v297_v3, 0.0 }
 0x183   :  { %1650 = vmatprep.subr.bf16.mxu1 %v1649_v23  ;;  %1666 = vmatprep.subr.bf16.mxu0 %v1665_v21 }
 0x184   :  { %1366 = vmatprep.mubr.f32.mxu1 %v319_v5  ;;  %1652 = vmatpush3.bf16.msra.mxu1 %v1649_v23  ;;  %v1669_v23 = vpack.c.bf16 %v876_v22, %v875_v20 }
 0x185   :  { %1367 = vmatmul.mubr.f32.gmra.mrb[14].mxu1 %v320_v4  ;;  %1654 = vmatprep.subr.bf16.mxu1 %v1653_v26 }
 0x188   :  { %1656 = vmatpush3.bf16.msra.mxu1 %v1653_v26  ;;  %v1673_v26 = vpack.c.bf16 %v878_v25, %v877_v24  ;;  %v887_v24 = vld [vmem:[#allocation11 + $0x70] sm:$0xff]  ;;  %v888_v25 = vld [vmem:[#allocation11 + $0x78] sm:$0xff] }
 0x189   :  { %1658 = vmatprep.subr.bf16.mxu1 %v1657_v29 }
 0x18c   :  { %1660 = vmatpush3.bf16.msra.mxu1 %v1657_v29  ;;  %v2072_v29 = vpack.c.bf16 %v880_v28, %v879_v27  ;;  %v1095_v27 = vld [vmem:[%s2143_s8] ss:$0 sm:$0xff] }
 0x18d   :  { %1662 = vmatprep.subr.bf16.mxu1 %v1661_v17 }
 0x190   :  { %1664 = vmatpush3.bf16.msra.mxu1 %v1661_v17 }
 0x191   :  { %1697 = vmatprep.subr.bf16.mxu1 %v1665_v21 }
 0x23c   :  { %v1347_v31 = vpop.f32.mrb[0].mxu1 }
 0x23d   :  { %v416_v32 = vadd.f32 %v1347_v31, %v1093_v30  ;;  %v410_v33 = vpop.f32.mrb[1].mxu1  ;;  %v882_v31 = vld [vmem:[#allocation11 + $0x48] sm:$0xff] }
 0x23e   :  { %v411_v34 = vadd.f32 %v1093_v30, %v410_v33  ;;  %v883_v33 = vld [vmem:[#allocation11 + $0x50] sm:$0xff] }
 0x23f   :  { %v490_v37 = vmax.f32 %v416_v32, 0.0 }
 0x240   :  { %v489_v35 = vmax.f32 %v411_v34, 0.0  ;;  %v1350_v36 = vpop.f32.mrb[2].mxu1  ;;  %v884_v34 = vld [vmem:[#allocation11 + $0x58] sm:$0xff] }
 0x241   :  { %v426_v38 = vadd.f32 %v1350_v36, %v1093_v30  ;;  %v420_v39 = vpop.f32.mrb[3].mxu1  ;;  %v885_v36 = vld [vmem:[#allocation11 + $0x60] sm:$0xff] }
 0x242   :  { %v421_v40 = vadd.f32 %v1093_v30, %v420_v39  ;;  %1401 = vmatprep.mubr.f32.mxu0 %v489_v35  ;;  %v2079_v35 = vpack.c.bf16 %v884_v34, %v883_v33  ;;  %v2091_v39 = vld [vmem:[%s2141_s6] ss:$0 sm:$0xff] }
 0x243   :  { %v492_v41 = vmax.f32 %v426_v38, 0.0  ;;  %1402 = vmatmul.mubr.f32.vlgmr.msra.gmra.mrb[16].mxu0 %v490_v37  ;;  %v886_v37 = vld [vmem:[#allocation11 + $0x68] sm:$0xff] }
 0x244   :  { %v491_v42 = vmax.f32 %v421_v40, 0.0  ;;  %v1353_v43 = vpop.f32.mrb[4].mxu1  ;;  %1668 = vmatpush3.bf16.msra.mxu0 %v1665_v21  ;;  %v2083_v38 = vpack.c.bf16 %v886_v37, %v885_v36 }
 0x245   :  { %v436_v44 = vadd.f32 %v1353_v43, %v1093_v30  ;;  %v430_v45 = vpop.f32.mrb[5].mxu1  ;;  %1670 = vmatprep.subr.bf16.mxu0 %v1669_v23 }
 0x246   :  { %v431_v46 = vadd.f32 %v1093_v30, %v430_v45  ;;  %1404 = vmatprep.mubr.f32.mxu0 %v491_v42 }
 0x247   :  { %v494_v47 = vmax.f32 %v436_v44, 0.0  ;;  %1405 = vmatmul.mubr.f32.gmra.mrb[18].mxu0 %v492_v41 }
 0x248   :  { %v493_v48 = vmax.f32 %v431_v46, 0.0  ;;  %v1356_v49 = vpop.f32.mrb[6].mxu1  ;;  %1672 = vmatpush3.bf16.msra.mxu0 %v1669_v23 }
 0x249   :  { %v446_v50 = vadd.f32 %v1356_v49, %v1093_v30  ;;  %v440_v51 = vpop.f32.mrb[7].mxu1  ;;  %1674 = vmatprep.subr.bf16.mxu0 %v1673_v26 }
 0x24a   :  { %1407 = vmatprep.mubr.f32.mxu0 %v493_v48  ;;  %v441_v52 = vadd.f32 %v1093_v30, %v440_v51 }
 0x24b   :  { %v496_v53 = vmax.f32 %v446_v50, 0.0  ;;  %1408 = vmatmul.mubr.f32.gmra.mrb[20].mxu0 %v494_v47 }
 0x24c   :  { %v495_v54 = vmax.f32 %v441_v52, 0.0  ;;  %v1359_v55 = vpop.f32.mrb[8].mxu1  ;;  %1676 = vmatpush3.bf16.msra.mxu0 %v1673_v26 }
 0x24d   :  { %v456_v56 = vadd.f32 %v1359_v55, %v1093_v30  ;;  %v450_v57 = vpop.f32.mrb[9].mxu1  ;;  %1678 = vmatprep.subr.bf16.mxu0 %v2072_v29 }
 0x24e   :  { %1410 = vmatprep.mubr.f32.mxu0 %v495_v54  ;;  %v451_v58 = vadd.f32 %v1093_v30, %v450_v57 }
 0x24f   :  { %1411 = vmatmul.mubr.f32.gmra.mrb[22].mxu0 %v496_v53  ;;  %v498_v59 = vmax.f32 %v456_v56, 0.0 }
 0x250   :  { %v497_v60 = vmax.f32 %v451_v58, 0.0  ;;  %v1362_v61 = vpop.f32.mrb[10].mxu1  ;;  %1680 = vmatpush3.bf16.msra.mxu0 %v2072_v29 }
 0x251   :  { %v466_v62 = vadd.f32 %v1362_v61, %v1093_v30  ;;  %v460_v63 = vpop.f32.mrb[11].mxu1 }
 0x252   :  { %1413 = vmatprep.mubr.f32.mxu0 %v497_v60  ;;  %v461_v0 = vadd.f32 %v1093_v30, %v460_v63 }
 0x253   :  { %1414 = vmatmul.mubr.f32.gmra.mrb[24].mxu0 %v498_v59  ;;  %v500_v1 = vmax.f32 %v466_v62, 0.0 }
 0x254   :  { %v499_v2 = vmax.f32 %v461_v0, 0.0  ;;  %v1365_v3 = vpop.f32.mrb[12].mxu1 }
 0x255   :  { %v476_v4 = vadd.f32 %v1365_v3, %v1093_v30  ;;  %v470_v5 = vpop.f32.mrb[13].mxu1 }
 0x256   :  { %1416 = vmatprep.mubr.f32.mxu0 %v499_v2  ;;  %v471_v6 = vadd.f32 %v1093_v30, %v470_v5 }
 0x257   :  { %1417 = vmatmul.mubr.f32.gmra.mrb[26].mxu0 %v500_v1  ;;  %v502_v7 = vmax.f32 %v476_v4, 0.0 }
 0x258   :  { %v501_v8 = vmax.f32 %v471_v6, 0.0  ;;  %v1368_v9 = vpop.f32.mrb[14].mxu1 }
 0x259   :  { %v486_v10 = vadd.f32 %v1368_v9, %v1093_v30  ;;  %v480_v11 = vpop.f32.mrb[15].mxu1 }
 0x25a   :  { %1419 = vmatprep.mubr.f32.mxu0 %v501_v8  ;;  %v481_v12 = vadd.f32 %v1093_v30, %v480_v11  ;;  %v881_v30 = vld [vmem:[#allocation11 + $0x40] sm:$0xff] }
 0x25b   :  { %1420 = vmatmul.mubr.f32.gmra.mrb[28].mxu0 %v502_v7  ;;  %v504_v13 = vmax.f32 %v486_v10, 0.0  ;;  %v2075_v32 = vpack.c.bf16 %v882_v31, %v881_v30 }
 0x25c   :  { %v503_v14 = vmax.f32 %v481_v12, 0.0 }
 0x25d   :  { %1682 = vmatprep.subr.bf16.mxu0 %v2075_v32 }
 0x25e   :  { %1422 = vmatprep.mubr.f32.mxu0 %v503_v14  ;;  %1684 = vmatpush3.bf16.msra.mxu0 %v2075_v32 }
 0x25f   :  { %1423 = vmatmul.mubr.f32.gmra.mrb[30].mxu0 %v504_v13  ;;  %1686 = vmatprep.subr.bf16.mxu0 %v2079_v35 }
 0x262   :  { %1688 = vmatpush3.bf16.msra.mxu0 %v2079_v35 }
 0x263   :  { %1690 = vmatprep.subr.bf16.mxu0 %v2083_v38 }
 0x266   :  { %1692 = vmatpush3.bf16.msra.mxu0 %v2083_v38 }
 0x316   :  { %v1403_v40 = vpop.f32.mrb[16].mxu0 }
 0x317   :  { %v600_v41 = vadd.f32 %v1403_v40, %v2091_v39  ;;  %v594_v42 = vpop.f32.mrb[17].mxu0 }
 0x318   :  { %v595_v43 = vadd.f32 %v2091_v39, %v594_v42 }
 0x319   :  { %v674_v46 = vmax.f32 %v600_v41, 0.0 }
 0x31a   :  { %v673_v44 = vmax.f32 %v595_v43, 0.0  ;;  %v1406_v45 = vpop.f32.mrb[18].mxu0 }
 0x31b   :  { %v610_v47 = vadd.f32 %v1406_v45, %v2091_v39  ;;  %v604_v48 = vpop.f32.mrb[19].mxu0 }
 0x31c   :  { %v605_v49 = vadd.f32 %v2091_v39, %v604_v48  ;;  %1457 = vmatprep.mubr.f32.mxu1 %v673_v44 }
 0x31d   :  { %1458 = vmatmul.mubr.f32.vlgmr.msra.gmra.mrb[16].mxu1 %v674_v46  ;;  %v676_v52 = vmax.f32 %v610_v47, 0.0 }
 0x31e   :  { %v675_v50 = vmax.f32 %v605_v49, 0.0  ;;  %v1409_v51 = vpop.f32.mrb[20].mxu0  ;;  %1705 = vmatpush3.bf16.msra.mxu1 %v1665_v21 }
 0x31f   :  { %v620_v53 = vadd.f32 %v1409_v51, %v2091_v39  ;;  %v614_v54 = vpop.f32.mrb[21].mxu0  ;;  %1698 = vmatprep.subr.bf16.mxu1 %v1669_v23 }
 0x320   :  { %v615_v55 = vadd.f32 %v2091_v39, %v614_v54  ;;  %1460 = vmatprep.mubr.f32.mxu1 %v675_v50 }
 0x321   :  { %v678_v56 = vmax.f32 %v620_v53, 0.0  ;;  %1461 = vmatmul.mubr.f32.gmra.mrb[18].mxu1 %v676_v52 }
 0x322   :  { %v677_v57 = vmax.f32 %v615_v55, 0.0  ;;  %v1412_v58 = vpop.f32.mrb[22].mxu0  ;;  %1706 = vmatpush3.bf16.msra.mxu1 %v1669_v23 }
 0x323   :  { %v630_v59 = vadd.f32 %v1412_v58, %v2091_v39  ;;  %v624_v60 = vpop.f32.mrb[23].mxu0  ;;  %1699 = vmatprep.subr.bf16.mxu1 %v1673_v26 }
 0x324   :  { %1463 = vmatprep.mubr.f32.mxu1 %v677_v57  ;;  %v625_v61 = vadd.f32 %v2091_v39, %v624_v60 }
 0x325   :  { %v680_v62 = vmax.f32 %v630_v59, 0.0  ;;  %1464 = vmatmul.mubr.f32.gmra.mrb[20].mxu1 %v678_v56 }
 0x326   :  { %v679_v63 = vmax.f32 %v625_v61, 0.0  ;;  %v1415_v0 = vpop.f32.mrb[24].mxu0  ;;  %1707 = vmatpush3.bf16.msra.mxu1 %v1673_v26  ;;  %v1693_v26 = vpack.c.bf16 %v888_v25, %v887_v24 }
 0x327   :  { %v640_v1 = vadd.f32 %v1415_v0, %v2091_v39  ;;  %v634_v2 = vpop.f32.mrb[25].mxu0  ;;  %1700 = vmatprep.subr.bf16.mxu1 %v2072_v29 }
 0x328   :  { %1466 = vmatprep.mubr.f32.mxu1 %v679_v63  ;;  %v635_v3 = vadd.f32 %v2091_v39, %v634_v2  ;;  %1694 = vmatprep.subr.bf16.mxu0 %v1693_v26 }
 0x329   :  { %1467 = vmatmul.mubr.f32.gmra.mrb[22].mxu1 %v680_v62  ;;  %v682_v4 = vmax.f32 %v640_v1, 0.0  ;;  %1696 = vmatpush3.bf16.msra.mxu0 %v1693_v26 }
 0x32a   :  { %v681_v5 = vmax.f32 %v635_v3, 0.0  ;;  %v1418_v6 = vpop.f32.mrb[26].mxu0  ;;  %1708 = vmatpush3.bf16.msra.mxu1 %v2072_v29 }
 0x32b   :  { %v650_v7 = vadd.f32 %v1418_v6, %v2091_v39  ;;  %v644_v8 = vpop.f32.mrb[27].mxu0  ;;  %1701 = vmatprep.subr.bf16.mxu1 %v2075_v32 }
 0x32c   :  { %1469 = vmatprep.mubr.f32.mxu1 %v681_v5  ;;  %v645_v9 = vadd.f32 %v2091_v39, %v644_v8 }
 0x32d   :  { %1470 = vmatmul.mubr.f32.gmra.mrb[24].mxu1 %v682_v4  ;;  %v684_v10 = vmax.f32 %v650_v7, 0.0 }
 0x32e   :  { %v683_v11 = vmax.f32 %v645_v9, 0.0  ;;  %v1421_v12 = vpop.f32.mrb[28].mxu0  ;;  %1709 = vmatpush3.bf16.msra.mxu1 %v2075_v32 }
 0x32f   :  { %v660_v13 = vadd.f32 %v1421_v12, %v2091_v39  ;;  %v654_v14 = vpop.f32.mrb[29].mxu0  ;;  %1702 = vmatprep.subr.bf16.mxu1 %v2079_v35  ;;  %v1096_v12 = vld [vmem:[%s2145_s10] ss:$0 sm:$0xff]  ;;  %s1894_s10 = smov [#allocation13]  }
 0x330   :  { %1472 = vmatprep.mubr.f32.mxu1 %v683_v11  ;;  %v655_v15 = vadd.f32 %v2091_v39, %v654_v14  ;;  %s1080_s17 = sshll.u32 %s1894_s10, 4  ;;  %s1081_s17 = int_to_ptr.vmem [resolvable:$true] %s1080_s17 }
 0x331   :  { %1473 = vmatmul.mubr.f32.gmra.mrb[26].mxu1 %v684_v10  ;;  %v686_v16 = vmax.f32 %v660_v13, 0.0  ;;  %s1854_s5 = scalar_lea.vmem %s1081_s17, 16  ;;  %s1858_s20 = scalar_lea.vmem %s1081_s17, 32 }
 0x332   :  { %v685_v17 = vmax.f32 %v655_v15, 0.0  ;;  %v1424_v18 = vpop.f32.mrb[30].mxu0  ;;  %1710 = vmatpush3.bf16.msra.mxu1 %v2079_v35  ;;  %p1855_p6 = scmp.ne.s32.totalorder %s1081_s17, %s1854_s5  ;;  %p1859_p7 = scmp.lt.s32.totalorder %s1081_s17, %s1081_s17 }
 0x333   :  { %v670_v19 = vadd.f32 %v1424_v18, %v2091_v39  ;;  %v664_v20 = vpop.f32.mrb[31].mxu0  ;;  %1703 = vmatprep.subr.bf16.mxu1 %v2083_v38  ;;  %p1860_p8 = scmp.lt.s32.totalorder %s1858_s20, %s1854_s5 }
 0x334   :  { %1475 = vmatprep.mubr.f32.mxu1 %v685_v17  ;;  %v665_v21 = vadd.f32 %v2091_v39, %v664_v20 }
 0x335   :  { %1476 = vmatmul.mubr.f32.gmra.mrb[28].mxu1 %v686_v16  ;;  %v688_v22 = vmax.f32 %v670_v19, 0.0  ;;  %p1861_p9 = por %p1860_p8, %p1859_p7 }
 0x336   :  { %v687_v23 = vmax.f32 %v665_v21, 0.0  ;;  %1711 = vmatpush3.bf16.msra.mxu1 %v2083_v38 }
 0x337   :  { %1704 = vmatprep.subr.bf16.mxu1 %v1693_v26  ;;  %p1862_p10 = pnand %p1861_p9, %p1855_p6 }
 0x338   :  { %1478 = vmatprep.mubr.f32.mxu1 %v687_v23 }
 0x339   :  { %1479 = vmatmul.mubr.f32.gmra.mrb[30].mxu1 %v688_v22 }
 0x33a   :  { %1712 = vmatpush3.bf16.msra.mxu1 %v1693_v26 }
 0x3f0   :  { %v1459_v28 = vpop.f32.mrb[16].mxu1 }
 0x3f1   :  { %v784_v29 = vadd.f32 %v1459_v28, %v1095_v27  ;;  %v778_v30 = vpop.f32.mrb[17].mxu1 }
 0x3f2   :  { %v779_v31 = vadd.f32 %v1095_v27, %v778_v30 }
 0x3f3   :  { %v858_v34 = vmax.f32 %v784_v29, 0.0 }
 0x3f4   :  { %v857_v32 = vmax.f32 %v779_v31, 0.0  ;;  %v1462_v33 = vpop.f32.mrb[18].mxu1 }
 0x3f5   :  { %v794_v35 = vadd.f32 %v1462_v33, %v1095_v27  ;;  %v788_v36 = vpop.f32.mrb[19].mxu1 }
 0x3f6   :  { %v789_v37 = vadd.f32 %v1095_v27, %v788_v36  ;;  %1513 = vmatprep.mubr.f32.mxu0 %v857_v32 }
 0x3f7   :  { %1514 = vmatmul.mubr.f32.vlgmr.msra.gmra.mrb[32].mxu0 %v858_v34  ;;  %v860_v40 = vmax.f32 %v794_v35, 0.0 }
 0x3f8   :  { %v859_v38 = vmax.f32 %v789_v37, 0.0  ;;  %v1465_v39 = vpop.f32.mrb[20].mxu1 }
 0x3f9   :  { %v804_v41 = vadd.f32 %v1465_v39, %v1095_v27  ;;  %v798_v42 = vpop.f32.mrb[21].mxu1 }
 0x3fa   :  { %v799_v43 = vadd.f32 %v1095_v27, %v798_v42  ;;  %1516 = vmatprep.mubr.f32.mxu0 %v859_v38 }
 0x3fb   :  { %v862_v44 = vmax.f32 %v804_v41, 0.0  ;;  %1517 = vmatmul.mubr.f32.gmra.mrb[34].mxu0 %v860_v40 }
 0x3fc   :  { %v861_v45 = vmax.f32 %v799_v43, 0.0  ;;  %v1468_v46 = vpop.f32.mrb[22].mxu1 }
 0x3fd   :  { %v814_v47 = vadd.f32 %v1468_v46, %v1095_v27  ;;  %v808_v48 = vpop.f32.mrb[23].mxu1 }
 0x3fe   :  { %1519 = vmatprep.mubr.f32.mxu0 %v861_v45  ;;  %v809_v49 = vadd.f32 %v1095_v27, %v808_v48 }
 0x3ff   :  { %v864_v50 = vmax.f32 %v814_v47, 0.0  ;;  %1520 = vmatmul.mubr.f32.gmra.mrb[36].mxu0 %v862_v44 }
 0x400   :  { %v863_v51 = vmax.f32 %v809_v49, 0.0  ;;  %v1471_v52 = vpop.f32.mrb[24].mxu1 }
 0x401   :  { %v824_v53 = vadd.f32 %v1471_v52, %v1095_v27  ;;  %v818_v54 = vpop.f32.mrb[25].mxu1 }
 0x402   :  { %1522 = vmatprep.mubr.f32.mxu0 %v863_v51  ;;  %v819_v55 = vadd.f32 %v1095_v27, %v818_v54 }
 0x403   :  { %1523 = vmatmul.mubr.f32.gmra.mrb[38].mxu0 %v864_v50  ;;  %v866_v56 = vmax.f32 %v824_v53, 0.0 }
 0x404   :  { %v865_v57 = vmax.f32 %v819_v55, 0.0  ;;  %v1474_v58 = vpop.f32.mrb[26].mxu1 }
 0x405   :  { %v834_v59 = vadd.f32 %v1474_v58, %v1095_v27  ;;  %v828_v60 = vpop.f32.mrb[27].mxu1 }
 0x406   :  { %1525 = vmatprep.mubr.f32.mxu1 %v865_v57  ;;  %v829_v61 = vadd.f32 %v1095_v27, %v828_v60 }
 0x407   :  { %1526 = vmatmul.mubr.f32.vlgmr.msra.gmra.mrb[32].mxu1 %v866_v56  ;;  %v868_v62 = vmax.f32 %v834_v59, 0.0 }
 0x408   :  { %v867_v63 = vmax.f32 %v829_v61, 0.0  ;;  %v1477_v0 = vpop.f32.mrb[28].mxu1 }
 0x409   :  { %v844_v1 = vadd.f32 %v1477_v0, %v1095_v27  ;;  %v838_v2 = vpop.f32.mrb[29].mxu1 }
 0x40a   :  { %1528 = vmatprep.mubr.f32.mxu1 %v867_v63  ;;  %v839_v3 = vadd.f32 %v1095_v27, %v838_v2 }
 0x40b   :  { %1529 = vmatmul.mubr.f32.gmra.mrb[34].mxu1 %v868_v62  ;;  %v870_v4 = vmax.f32 %v844_v1, 0.0 }
 0x40c   :  { %v869_v5 = vmax.f32 %v839_v3, 0.0  ;;  %v1480_v6 = vpop.f32.mrb[30].mxu1 }
 0x40d   :  { %v854_v7 = vadd.f32 %v1480_v6, %v1095_v27  ;;  %v848_v8 = vpop.f32.mrb[31].mxu1 }
 0x40e   :  { %1531 = vmatprep.mubr.f32.mxu1 %v869_v5  ;;  %v849_v9 = vadd.f32 %v1095_v27, %v848_v8 }
 0x40f   :  { %1532 = vmatmul.mubr.f32.gmra.mrb[36].mxu1 %v870_v4  ;;  %v872_v10 = vmax.f32 %v854_v7, 0.0 }
 0x410   :  { %v871_v11 = vmax.f32 %v849_v9, 0.0 }
 0x412   :  { %1534 = vmatprep.mubr.f32.mxu1 %v871_v11 }
 0x413   :  { %1535 = vmatmul.mubr.f32.gmra.mrb[38].mxu1 %v872_v10 }
 0x4ca   :  { %v1515_v13 = vpop.f32.mrb[32].mxu0 }
 0x4cb   :  { %v962_v14 = vpop.f32.mrb[33].mxu0  ;;  %v968_v18 = vadd.f32 %v1515_v13, %v1096_v12 }
 0x4cc   :  { %v963_v15 = vadd.f32 %v1096_v12, %v962_v14 }
 0x4ce   :  { %v1518_v16 = vpop.f32.mrb[34].mxu0  ;;  %1041 = vxpose.xlu0.b32.start [1/16] (narrow) %v963_v15, 8 }
 0x4cf   :  { %v972_v17 = vpop.f32.mrb[35].mxu0  ;;  %v978_v24 = vadd.f32 %v1518_v16, %v1096_v12 }
 0x4d0   :  { %v973_v21 = vadd.f32 %v1096_v12, %v972_v17 }
 0x4d2   :  { %v1521_v19 = vpop.f32.mrb[36].mxu0  ;;  %1042 = vxpose.xlu0.b32.cont [2/16] (narrow) %v968_v18, 8 }
 0x4d3   :  { %v982_v20 = vpop.f32.mrb[37].mxu0  ;;  %v988_v30 = vadd.f32 %v1521_v19, %v1096_v12 }
 0x4d4   :  { %v983_v27 = vadd.f32 %v1096_v12, %v982_v20 }
 0x4d6   :  { %1043 = vxpose.xlu0.b32.cont [3/16] (narrow) %v973_v21, 8  ;;  %v1524_v22 = vpop.f32.mrb[38].mxu0 }
 0x4d7   :  { %v992_v23 = vpop.f32.mrb[39].mxu0  ;;  %v998_v36 = vadd.f32 %v1524_v22, %v1096_v12 }
 0x4d8   :  { %v993_v33 = vadd.f32 %v1096_v12, %v992_v23 }
 0x4da   :  { %1044 = vxpose.xlu0.b32.cont [4/16] (narrow) %v978_v24, 8  ;;  %v1527_v25 = vpop.f32.mrb[32].mxu1 }
 0x4db   :  { %v1002_v26 = vpop.f32.mrb[33].mxu1  ;;  %v1008_v38 = vadd.f32 %v1527_v25, %v1096_v12 }
 0x4dc   :  { %v1003_v37 = vadd.f32 %v1096_v12, %v1002_v26 }
 0x4de   :  { %1045 = vxpose.xlu0.b32.cont [5/16] (narrow) %v983_v27, 8  ;;  %v1530_v28 = vpop.f32.mrb[34].mxu1 }
 0x4df   :  { %v1012_v29 = vpop.f32.mrb[35].mxu1  ;;  %v1018_v40 = vadd.f32 %v1530_v28, %v1096_v12 }
 0x4e0   :  { %v1013_v39 = vadd.f32 %v1096_v12, %v1012_v29 }
 0x4e2   :  { %1046 = vxpose.xlu0.b32.cont [6/16] (narrow) %v988_v30, 8  ;;  %v1533_v31 = vpop.f32.mrb[36].mxu1 }
 0x4e3   :  { %v1022_v32 = vpop.f32.mrb[37].mxu1  ;;  %v1028_v42 = vadd.f32 %v1533_v31, %v1096_v12 }
 0x4e4   :  { %v1023_v41 = vadd.f32 %v1096_v12, %v1022_v32 }
 0x4e6   :  { %1047 = vxpose.xlu0.b32.cont [7/16] (narrow) %v993_v33, 8  ;;  %v1536_v34 = vpop.f32.mrb[38].mxu1 }
 0x4e7   :  { %v1032_v35 = vpop.f32.mrb[39].mxu1  ;;  %v1038_v44 = vadd.f32 %v1536_v34, %v1096_v12 }
 0x4e8   :  { %v1033_v43 = vadd.f32 %v1096_v12, %v1032_v35 }
 0x4ea   :  { %1048 = vxpose.xlu0.b32.cont [8/16] (narrow) %v998_v36, 8 }
 0x4ee   :  { %1049 = vxpose.xlu0.b32.cont [9/16] (narrow) %v1003_v37, 8 }
 0x4f2   :  { %1050 = vxpose.xlu0.b32.cont [10/16] (narrow) %v1008_v38, 8 }
 0x4f6   :  { %1051 = vxpose.xlu0.b32.cont [11/16] (narrow) %v1013_v39, 8 }
 0x4fa   :  { %1052 = vxpose.xlu0.b32.cont [12/16] (narrow) %v1018_v40, 8 }
 0x4fe   :  { %1053 = vxpose.xlu0.b32.cont [13/16] (narrow) %v1023_v41, 8 }
 0x502   :  { %1054 = vxpose.xlu0.b32.cont [14/16] (narrow) %v1028_v42, 8 }
 0x506   :  { %1055 = vxpose.xlu0.b32.cont [15/16] (narrow) %v1033_v43, 8 }
 0x50a   :  { %1056 = vxpose.xlu0.b32.end [16/16] (narrow) %v1038_v44, 8 }
 0x54e   :  { %v1057_v45 = vpop.trf.xlu0 }
 0x54f   :  { %1073 = vst [vmem:[#allocation13] sm:$0x1] %v1057_v45 }
 0x550   :  { %1865 = shalt.err (!%p1862_p10)
}
 0x551   :  { %s1866_s22 = scalar_lea.hbm %s2146_s11, 16 }
 0x552   :  { %p1867_p11 = scmp.ne.s32.totalorder %s2146_s11, %s1866_s22  ;;  %p1870_p12 = scmp.lt.u32.totalorder %s1866_s22, %s2146_s11 }
 0x554   :  { %p1872_p13 = pnand %p1870_p12, %p1867_p11 }
 0x556   :  { %1875 = shalt.err (!%p1872_p13)
}
 0x557   :  { %1083 = dma.vmem_to_hbm [thread:$0]  %s1081_s17, 16, %s2146_s11, [#allocation4]  }
 0x558   :  { %1884 = dma.done.wait [#allocation4], 16  }
 0x559   :  { %1885 = vsyncadd [#allocation4], 4294967280 }
 0x55a   :  { %1087 = vsyncpa [#allocation3], 1 }
 0x55b   :  { %1088 = vsyncpa [#allocation6], 1 }
 0x55c   :  { %1089 = vsyncpa [#allocation9], 1 }
 0x55d   :  { %1090 = vsyncpa [#allocation12], 1 }
 0x55e   :  { %1091 = vsyncpa [#allocation4], 1 }

// kernel: tpu_custom_call.1
= control target key start
LH: loop header
LB: loop body
LE: loop exit
PB: predicated region body
PF: predicated region fallthrough
CT: control target
= control target key end

     0   :  { %16 = vsyncpa [#allocation3], 0  ;;  %s2135_s0 = inlined_call_operand.hbm [shape: f32[128,128], index: 0, kind: input, shape index: {}]   ;;  %s2136_s1 = inlined_call_operand.hbm [shape: f32[128,128], index: 1, kind: input, shape index: {}]   ;;  %s2137_s2 = inlined_call_operand.vmem [shape: f32[1,128], index: 2, kind: input, shape index: {}]   ;;  %s2138_s3 = inlined_call_operand.hbm [shape: f32[128,128], index: 3, kind: input, shape index: {}]   ;;  %s2139_s4 = inlined_call_operand.vmem [shape: f32[1,128], index: 4, kind: input, shape index: {}]   ;;  %s2140_s5 = inlined_call_operand.hbm [shape: f32[128,128], index: 5, kind: input, shape index: {}]   ;;  %s2141_s6 = inlined_call_operand.vmem [shape: f32[1,128], index: 6, kind: input, shape index: {}]   ;;  %s2142_s7 = inlined_call_operand.hbm [shape: f32[128,128], index: 7, kind: input, shape index: {}]   ;;  %s2143_s8 = inlined_call_operand.vmem [shape: f32[1,128], index: 8, kind: input, shape index: {}]   ;;  %s2144_s9 = inlined_call_operand.hbm [shape: f32[128,128], index: 9, kind: input, shape index: {}]   ;;  %s2145_s10 = inlined_call_operand.vmem [shape: f32[1,128], index: 10, kind: input, shape index: {}]   ;;  %s2146_s11 = inlined_call_operand.hbm [shape: f32[1,128], index: 11, kind: output, shape index: {}]  }
   0x1   :  { %17 = vsyncpa [#allocation6], 0 }
   0x2   :  { %18 = vsyncpa [#allocation9], 0 }
   0x3   :  { %19 = vsyncpa [#allocation12], 0 }
   0x4   :  { %20 = vsyncpa [#allocation4], 0  ;;  %s1886_s17 = smov [#allocation5]   ;;  %s1887_s19 = smov [#allocation8]  }
   0x5   :  { %s38_s18 = sshll.u32 %s1886_s17, 4  ;;  %s66_s20 = sshll.u32 %s1887_s19, 4  ;;  %s39_s18 = int_to_ptr.vmem [resolvable:$true] %s38_s18  ;;  %s1955_s20 = int_to_ptr.vmem [resolvable:$true] %s66_s20 }
   0x6   :  { %s1722_s23 = scalar_lea.hbm %s2136_s1, 2048 }
   0x7   :  { %p1723_p0 = scmp.ne.s32.totalorder %s2136_s1, %s1722_s23  ;;  %p1726_p1 = scmp.lt.u32.totalorder %s1722_s23, %s2136_s1 }
   0x9   :  { %p1728_p2 = pnand %p1726_p1, %p1723_p0 }
   0xb   :  { %1731 = shalt.err (!%p1728_p2)
}
   0xc   :  { %s1732_s28 = scalar_lea.vmem %s39_s18, 2048  ;;  %p1737_p4 = scmp.lt.s32.totalorder %s39_s18, %s39_s18 }
   0xd   :  { %p1733_p3 = scmp.ne.s32.totalorder %s39_s18, %s1732_s28  ;;  %p1738_p5 = scmp.lt.s32.totalorder %s1732_s28, %s1732_s28 }
   0xf   :  { %p1739_p6 = por %p1738_p5, %p1737_p4 }
  0x11   :  { %p1740_p7 = pnand %p1739_p6, %p1733_p3 }
  0x13   :  { %1743 = shalt.err (!%p1740_p7)
}
  0x14   :  { %s1888_s29 = smov 128   ;;  %s1889_s30 = smov 8  }
  0x15   :  { %44 = dma.hbm_to_vmem [thread:$0]  %s2136_s1, 2048, %s39_s18, [#allocation6], %s1888_s29, %s1888_s29, %s1889_s30  }
  0x16   :  { %s1744_s16 = scalar_lea.hbm %s2140_s5, 2048 }
  0x17   :  { %p1745_p8 = scmp.ne.s32.totalorder %s2140_s5, %s1744_s16  ;;  %p1748_p9 = scmp.lt.u32.totalorder %s1744_s16, %s2140_s5 }
  0x19   :  { %p1750_p10 = pnand %p1748_p9, %p1745_p8 }
  0x1b   :  { %1753 = shalt.err (!%p1750_p10)
}
  0x1c   :  { %s1754_s23 = scalar_lea.vmem %s1955_s20, 2048  ;;  %p1759_p12 = scmp.lt.s32.totalorder %s1955_s20, %s1955_s20 }
  0x1d   :  { %p1755_p11 = scmp.ne.s32.totalorder %s1955_s20, %s1754_s23  ;;  %p1760_p13 = scmp.lt.s32.totalorder %s1754_s23, %s1754_s23 }
  0x1f   :  { %p1761_p0 = por %p1760_p13, %p1759_p12 }
  0x21   :  { %p1762_p1 = pnand %p1761_p0, %p1755_p11 }
  0x23   :  { %1765 = shalt.err (!%p1762_p1)
}
  0x24   :  { %72 = dma.hbm_to_vmem [thread:$0]  %s2140_s5, 2048, %s1955_s20, [#allocation9], %s1888_s29, %s1888_s29, %s1889_s30  }
  0x25   :  { %s1890_s24 = smov [#allocation2]   ;;  %s1891_s26 = smov [#allocation7]  }
  0x26   :  { %s26_s25 = sshll.u32 %s1890_s24, 4  ;;  %s52_s27 = sshll.u32 %s1891_s26, 4  ;;  %s27_s25 = int_to_ptr.vmem [resolvable:$true] %s26_s25  ;;  %s1992_s27 = int_to_ptr.vmem [resolvable:$true] %s52_s27 }
  0x27   :  { %s1766_s13 = scalar_lea.hbm %s2135_s0, 2048 }
  0x28   :  { %p1767_p2 = scmp.ne.s32.totalorder %s2135_s0, %s1766_s13  ;;  %p1770_p3 = scmp.lt.u32.totalorder %s1766_s13, %s2135_s0 }
  0x2a   :  { %p1772_p4 = pnand %p1770_p3, %p1767_p2 }
  0x2c   :  { %1775 = shalt.err (!%p1772_p4)
}
  0x2d   :  { %s1776_s5 = scalar_lea.vmem %s27_s25, 2048  ;;  %p1781_p6 = scmp.lt.s32.totalorder %s27_s25, %s27_s25 }
  0x2e   :  { %p1777_p5 = scmp.ne.s32.totalorder %s27_s25, %s1776_s5  ;;  %p1782_p7 = scmp.lt.s32.totalorder %s1776_s5, %s1776_s5 }
  0x30   :  { %p1783_p8 = por %p1782_p7, %p1781_p6 }
  0x32   :  { %p1784_p9 = pnand %p1783_p8, %p1777_p5 }
  0x34   :  { %1787 = shalt.err (!%p1784_p9)
}
  0x35   :  { %32 = dma.hbm_to_vmem [thread:$0]  %s2135_s0, 2048, %s27_s25, [#allocation3], %s1888_s29, %s1888_s29, %s1889_s30  }
  0x36   :  { %s1788_s23 = scalar_lea.hbm %s2138_s3, 2048 }
  0x37   :  { %p1789_p10 = scmp.ne.s32.totalorder %s2138_s3, %s1788_s23  ;;  %p1792_p11 = scmp.lt.u32.totalorder %s1788_s23, %s2138_s3 }
  0x39   :  { %p1794_p12 = pnand %p1792_p11, %p1789_p10 }
  0x3b   :  { %1797 = shalt.err (!%p1794_p12)
}
  0x3c   :  { %s1798_s28 = scalar_lea.vmem %s1992_s27, 2048  ;;  %p1803_p0 = scmp.lt.s32.totalorder %s1992_s27, %s1992_s27 }
  0x3d   :  { %p1799_p13 = scmp.ne.s32.totalorder %s1992_s27, %s1798_s28  ;;  %p1804_p1 = scmp.lt.s32.totalorder %s1798_s28, %s1798_s28 }
  0x3f   :  { %p1805_p2 = por %p1804_p1, %p1803_p0 }
  0x41   :  { %p1806_p3 = pnand %p1805_p2, %p1799_p13 }
  0x43   :  { %1809 = shalt.err (!%p1806_p3)
}
  0x44   :  { %58 = dma.hbm_to_vmem [thread:$0]  %s2138_s3, 2048, %s1992_s27, [#allocation6], %s1888_s29, %s1888_s29, %s1889_s30  }
  0x45   :  { %s1892_s12 = smov [#allocation10]   ;;  %s1893_s14 = smov [#allocation11]  }
  0x46   :  { %s80_s13 = sshll.u32 %s1892_s12, 4  ;;  %s94_s15 = sshll.u32 %s1893_s14, 4  ;;  %s81_s13 = int_to_ptr.vmem [resolvable:$true] %s80_s13  ;;  %s2029_s15 = int_to_ptr.vmem [resolvable:$true] %s94_s15 }
  0x47   :  { %s1810_s5 = scalar_lea.hbm %s2142_s7, 2048 }
  0x48   :  { %p1811_p4 = scmp.ne.s32.totalorder %s2142_s7, %s1810_s5  ;;  %p1814_p5 = scmp.lt.u32.totalorder %s1810_s5, %s2142_s7 }
  0x4a   :  { %p1816_p6 = pnand %p1814_p5, %p1811_p4 }
  0x4c   :  { %1819 = shalt.err (!%p1816_p6)
}
  0x4d   :  { %s1820_s3 = scalar_lea.vmem %s81_s13, 2048  ;;  %p1825_p8 = scmp.lt.s32.totalorder %s81_s13, %s81_s13 }
  0x4e   :  { %p1821_p7 = scmp.ne.s32.totalorder %s81_s13, %s1820_s3  ;;  %p1826_p9 = scmp.lt.s32.totalorder %s1820_s3, %s1820_s3 }
  0x50   :  { %p1827_p10 = por %p1826_p9, %p1825_p8 }
  0x52   :  { %p1828_p11 = pnand %p1827_p10, %p1821_p7 }
  0x54   :  { %1831 = shalt.err (!%p1828_p11)
}
  0x55   :  { %86 = dma.hbm_to_vmem [thread:$0]  %s2142_s7, 2048, %s81_s13, [#allocation9], %s1888_s29, %s1888_s29, %s1889_s30  }
  0x56   :  { %s1832_s24 = scalar_lea.hbm %s2144_s9, 2048 }
  0x57   :  { %p1833_p12 = scmp.ne.s32.totalorder %s2144_s9, %s1832_s24  ;;  %p1836_p13 = scmp.lt.u32.totalorder %s1832_s24, %s2144_s9 }
  0x59   :  { %p1838_p0 = pnand %p1836_p13, %p1833_p12 }
  0x5b   :  { %1841 = shalt.err (!%p1838_p0)
}
  0x5c   :  { %s1842_s12 = scalar_lea.vmem %s2029_s15, 2048  ;;  %p1847_p2 = scmp.lt.s32.totalorder %s2029_s15, %s2029_s15 }
  0x5d   :  { %p1843_p1 = scmp.ne.s32.totalorder %s2029_s15, %s1842_s12  ;;  %p1848_p3 = scmp.lt.s32.totalorder %s1842_s12, %s1842_s12 }
  0x5f   :  { %p1849_p4 = por %p1848_p3, %p1847_p2 }
  0x61   :  { %p1850_p5 = pnand %p1849_p4, %p1843_p1 }
  0x63   :  { %1853 = shalt.err (!%p1850_p5)
}
  0x64   :  { %100 = dma.hbm_to_vmem [thread:$0]  %s2144_s9, 2048, %s2029_s15, [#allocation12], %s1888_s29, %s1888_s29, %s1889_s30  }
  0x65   :  { %1876 = dma.done.wait [#allocation3], 2048  }
  0x66   :  { %1877 = vsyncadd [#allocation3], 4294965248 }
  0x67   :  { %1878 = dma.done.wait [#allocation6], 4096  }
  0x68   :  { %1879 = vsyncadd [#allocation6], 4294963200 }
  0x69   :  { %1880 = dma.done.wait [#allocation9], 4096  }
  0x6a   :  { %1881 = vsyncadd [#allocation9], 4294963200 }
  0x6b   :  { %1882 = dma.done.wait [#allocation12], 2048  }
  0x6c   :  { %1883 = vsyncadd [#allocation12], 4294965248  ;;  %v137_v0 = vld [vmem:[#allocation5] sm:$0xff]  ;;  %v138_v1 = vld [vmem:[#allocation5 + $0x8] sm:$0xff] }
  0x6d   :  { %v139_v2 = vld [vmem:[#allocation5 + $0x10] sm:$0xff]  ;;  %v1537_v3 = vpack.c.bf16 %v138_v1, %v137_v0  ;;  %v140_v4 = vld [vmem:[#allocation5 + $0x18] sm:$0xff]  ;;  %v141_v6 = vld [vmem:[#allocation5 + $0x20] sm:$0xff] }
  0x6e   :  { %v1541_v5 = vpack.c.bf16 %v140_v4, %v139_v2  ;;  %v142_v7 = vld [vmem:[#allocation5 + $0x28] sm:$0xff]  ;;  %v121_v9 = vld [vmem:[#allocation2] sm:$0xff]  ;;  %v143_v10 = vld [vmem:[#allocation5 + $0x30] sm:$0xff] }
  0x6f   :  { %1538 = vmatprep.subr.bf16.mxu0 %v1537_v3  ;;  %v1545_v8 = vpack.c.bf16 %v142_v7, %v141_v6  ;;  %v144_v11 = vld [vmem:[#allocation5 + $0x38] sm:$0xff]  ;;  %1289 = vmatprep.mubr.f32.mxu0 %v121_v9  ;;  %v145_v13 = vld [vmem:[#allocation5 + $0x40] sm:$0xff]  ;;  %v146_v14 = vld [vmem:[#allocation5 + $0x48] sm:$0xff] }
  0x70   :  { %1540 = vmatpush3.bf16.msra.mxu0 %v1537_v3  ;;  %v1549_v12 = vpack.c.bf16 %v144_v11, %v143_v10  ;;  %v321_v15 = vld [vmem:[#allocation7] sm:$0xff]  ;;  %v322_v16 = vld [vmem:[#allocation7 + $0x8] sm:$0xff]  ;;  %v323_v17 = vld [vmem:[#allocation7 + $0x10] sm:$0xff]  ;;  %v1553_v21 = vpack.c.bf16 %v146_v14, %v145_v13 }
  0x71   :  { %1542 = vmatprep.subr.bf16.mxu0 %v1541_v5  ;;  %v324_v18 = vld [vmem:[#allocation7 + $0x18] sm:$0xff]  ;;  %v1569_v19 = vpack.c.bf16 %v322_v16, %v321_v15  ;;  %v325_v22 = vld [vmem:[#allocation7 + $0x20] sm:$0xff]  ;;  %v326_v23 = vld [vmem:[#allocation7 + $0x28] sm:$0xff] }
  0x72   :  { %v1573_v20 = vpack.c.bf16 %v324_v18, %v323_v17  ;;  %v147_v24 = vld [vmem:[#allocation5 + $0x50] sm:$0xff]  ;;  %v148_v25 = vld [vmem:[#allocation5 + $0x58] sm:$0xff]  ;;  %v1577_v26 = vpack.c.bf16 %v326_v23, %v325_v22  ;;  %v149_v30 = vld [vmem:[#allocation5 + $0x60] sm:$0xff] }
  0x73   :  { %1570 = vmatprep.subr.bf16.mxu1 %v1569_v19  ;;  %v1557_v27 = vpack.c.bf16 %v148_v25, %v147_v24  ;;  %v327_v28 = vld [vmem:[#allocation7 + $0x30] sm:$0xff]  ;;  %v328_v29 = vld [vmem:[#allocation7 + $0x38] sm:$0xff]  ;;  %v150_v31 = vld [vmem:[#allocation5 + $0x68] sm:$0xff] }
  0x74   :  { %1544 = vmatpush3.bf16.msra.mxu0 %v1541_v5  ;;  %1572 = vmatpush3.bf16.msra.mxu1 %v1569_v19  ;;  %v1581_v32 = vpack.c.bf16 %v328_v29, %v327_v28  ;;  %v1561_v33 = vpack.c.bf16 %v150_v31, %v149_v30  ;;  %v329_v34 = vld [vmem:[#allocation7 + $0x40] sm:$0xff]  ;;  %v330_v35 = vld [vmem:[#allocation7 + $0x48] sm:$0xff]  ;;  %v151_v36 = vld [vmem:[#allocation5 + $0x70] sm:$0xff] }
  0x75   :  { %1546 = vmatprep.subr.bf16.mxu0 %v1545_v8  ;;  %1574 = vmatprep.subr.bf16.mxu1 %v1573_v20  ;;  %v152_v37 = vld [vmem:[#allocation5 + $0x78] sm:$0xff]  ;;  %v1585_v38 = vpack.c.bf16 %v330_v35, %v329_v34  ;;  %v331_v40 = vld [vmem:[#allocation7 + $0x50] sm:$0xff]  ;;  %v333_v43 = vld [vmem:[#allocation7 + $0x60] sm:$0xff] }
  0x76   :  { %v1565_v39 = vpack.c.bf16 %v152_v37, %v151_v36  ;;  %v332_v41 = vld [vmem:[#allocation7 + $0x58] sm:$0xff]  ;;  %v334_v44 = vld [vmem:[#allocation7 + $0x68] sm:$0xff]  ;;  %v123_v47 = vld [vmem:[#allocation2 + $0x10] sm:$0xff] }
  0x77   :  { %v1589_v42 = vpack.c.bf16 %v332_v41, %v331_v40  ;;  %v122_v45 = vld [vmem:[#allocation2 + $0x8] sm:$0xff]  ;;  %v1593_v46 = vpack.c.bf16 %v334_v44, %v333_v43  ;;  %v124_v48 = vld [vmem:[#allocation2 + $0x18] sm:$0xff]  ;;  %v125_v49 = vld [vmem:[#allocation2 + $0x20] sm:$0xff] }
  0x78   :  { %1548 = vmatpush3.bf16.msra.mxu0 %v1545_v8  ;;  %1576 = vmatpush3.bf16.msra.mxu1 %v1573_v20  ;;  %v126_v50 = vld [vmem:[#allocation2 + $0x28] sm:$0xff]  ;;  %v127_v51 = vld [vmem:[#allocation2 + $0x30] sm:$0xff]  ;;  %v128_v52 = vld [vmem:[#allocation2 + $0x38] sm:$0xff] }
  0x79   :  { %1550 = vmatprep.subr.bf16.mxu0 %v1549_v12  ;;  %1578 = vmatprep.subr.bf16.mxu1 %v1577_v26  ;;  %v129_v53 = vld [vmem:[#allocation2 + $0x40] sm:$0xff]  ;;  %v130_v54 = vld [vmem:[#allocation2 + $0x48] sm:$0xff]  ;;  %v131_v55 = vld [vmem:[#allocation2 + $0x50] sm:$0xff] }
  0x7a   :  { %v132_v56 = vld [vmem:[#allocation2 + $0x58] sm:$0xff]  ;;  %v133_v57 = vld [vmem:[#allocation2 + $0x60] sm:$0xff]  ;;  %v134_v58 = vld [vmem:[#allocation2 + $0x68] sm:$0xff] }
  0x7b   :  { %v135_v59 = vld [vmem:[#allocation2 + $0x70] sm:$0xff]  ;;  %v136_v60 = vld [vmem:[#allocation2 + $0x78] sm:$0xff]  ;;  %v505_v0 = vld [vmem:[#allocation8] sm:$0xff] }
  0x7c   :  { %1552 = vmatpush3.bf16.msra.mxu0 %v1549_v12  ;;  %1580 = vmatpush3.bf16.msra.mxu1 %v1577_v26  ;;  %v335_v61 = vld [vmem:[#allocation7 + $0x70] sm:$0xff]  ;;  %v336_v62 = vld [vmem:[#allocation7 + $0x78] sm:$0xff]  ;;  %v506_v1 = vld [vmem:[#allocation8 + $0x8] sm:$0xff] }
  0x7d   :  { %1554 = vmatprep.subr.bf16.mxu0 %v1553_v21  ;;  %1582 = vmatprep.subr.bf16.mxu1 %v1581_v32  ;;  %v1597_v63 = vpack.c.bf16 %v336_v62, %v335_v61  ;;  %v507_v2 = vld [vmem:[#allocation8 + $0x10] sm:$0xff]  ;;  %v1601_v3 = vpack.c.bf16 %v506_v1, %v505_v0  ;;  %v508_v4 = vld [vmem:[#allocation8 + $0x18] sm:$0xff]  ;;  %v509_v6 = vld [vmem:[#allocation8 + $0x20] sm:$0xff] }
  0x7e   :  { %v1605_v5 = vpack.c.bf16 %v508_v4, %v507_v2  ;;  %v510_v7 = vld [vmem:[#allocation8 + $0x28] sm:$0xff]  ;;  %v511_v9 = vld [vmem:[#allocation8 + $0x30] sm:$0xff]  ;;  %v512_v10 = vld [vmem:[#allocation8 + $0x38] sm:$0xff] }
  0x7f   :  { %v1609_v8 = vpack.c.bf16 %v510_v7, %v509_v6  ;;  %v1613_v11 = vpack.c.bf16 %v512_v10, %v511_v9  ;;  %v513_v12 = vld [vmem:[#allocation8 + $0x40] sm:$0xff]  ;;  %v514_v13 = vld [vmem:[#allocation8 + $0x48] sm:$0xff]  ;;  %v515_v15 = vld [vmem:[#allocation8 + $0x50] sm:$0xff] }
  0x80   :  { %1556 = vmatpush3.bf16.msra.mxu0 %v1553_v21  ;;  %1584 = vmatpush3.bf16.msra.mxu1 %v1581_v32  ;;  %v1617_v14 = vpack.c.bf16 %v514_v13, %v513_v12  ;;  %v516_v16 = vld [vmem:[#allocation8 + $0x58] sm:$0xff]  ;;  %v517_v18 = vld [vmem:[#allocation8 + $0x60] sm:$0xff]  ;;  %v518_v19 = vld [vmem:[#allocation8 + $0x68] sm:$0xff] }
  0x81   :  { %1558 = vmatprep.subr.bf16.mxu0 %v1557_v27  ;;  %1586 = vmatprep.subr.bf16.mxu1 %v1585_v38  ;;  %v1621_v17 = vpack.c.bf16 %v516_v16, %v515_v15  ;;  %v1625_v20 = vpack.c.bf16 %v518_v19, %v517_v18  ;;  %v1092_v21 = vld [vmem:[%s2137_s2] ss:$0 sm:$0xff]  ;;  %v519_v6 = vld [vmem:[#allocation8 + $0x70] sm:$0xff]  ;;  %v520_v7 = vld [vmem:[#allocation8 + $0x78] sm:$0xff] }
  0x82   :  { %v689_v9 = vld [vmem:[#allocation10] sm:$0xff]  ;;  %v690_v10 = vld [vmem:[#allocation10 + $0x8] sm:$0xff]  ;;  %v692_v13 = vld [vmem:[#allocation10 + $0x18] sm:$0xff] }
  0x83   :  { %v1633_v12 = vpack.c.bf16 %v690_v10, %v689_v9  ;;  %v693_v15 = vld [vmem:[#allocation10 + $0x20] sm:$0xff]  ;;  %v694_v16 = vld [vmem:[#allocation10 + $0x28] sm:$0xff]  ;;  %v695_v18 = vld [vmem:[#allocation10 + $0x30] sm:$0xff] }
  0x84   :  { %1560 = vmatpush3.bf16.msra.mxu0 %v1557_v27  ;;  %1588 = vmatpush3.bf16.msra.mxu1 %v1585_v38  ;;  %v696_v19 = vld [vmem:[#allocation10 + $0x38] sm:$0xff] }
  0x85   :  { %1562 = vmatprep.subr.bf16.mxu0 %v1561_v33  ;;  %1590 = vmatprep.subr.bf16.mxu1 %v1589_v42 }
  0x88   :  { %1564 = vmatpush3.bf16.msra.mxu0 %v1561_v33  ;;  %1592 = vmatpush3.bf16.msra.mxu1 %v1589_v42 }
  0x89   :  { %1566 = vmatprep.subr.bf16.mxu0 %v1565_v39  ;;  %1594 = vmatprep.subr.bf16.mxu1 %v1593_v46 }
  0x8c   :  { %1568 = vmatpush3.bf16.msra.mxu0 %v1565_v39  ;;  %1596 = vmatpush3.bf16.msra.mxu1 %v1593_v46 }
  0x8d   :  { %1598 = vmatprep.subr.bf16.mxu1 %v1597_v63  ;;  %1602 = vmatprep.subr.bf16.mxu0 %v1601_v3 }
  0x8f   :  { %1290 = vmatmul.mubr.f32.vlgmr.msra.gmra.mrb[0].mxu0 %v122_v45 }
  0x90   :  { %1292 = vmatprep.mubr.f32.mxu0 %v123_v47  ;;  %1600 = vmatpush3.bf16.msra.mxu1 %v1597_v63 }
  0x91   :  { %1604 = vmatpush3.bf16.msra.mxu0 %v1601_v3  ;;  %1634 = vmatprep.subr.bf16.mxu1 %v1633_v12 }
  0x92   :  { %1606 = vmatprep.subr.bf16.mxu0 %v1605_v5 }
  0x93   :  { %1293 = vmatmul.mubr.f32.gmra.mrb[2].mxu0 %v124_v48 }
  0x94   :  { %1295 = vmatprep.mubr.f32.mxu0 %v125_v49 }
  0x95   :  { %1608 = vmatpush3.bf16.msra.mxu0 %v1605_v5 }
  0x96   :  { %1610 = vmatprep.subr.bf16.mxu0 %v1609_v8 }
  0x97   :  { %1296 = vmatmul.mubr.f32.gmra.mrb[4].mxu0 %v126_v50 }
  0x98   :  { %1298 = vmatprep.mubr.f32.mxu0 %v127_v51 }
  0x99   :  { %1612 = vmatpush3.bf16.msra.mxu0 %v1609_v8  ;;  %v1629_v8 = vpack.c.bf16 %v520_v7, %v519_v6 }
  0x9a   :  { %1614 = vmatprep.subr.bf16.mxu0 %v1613_v11 }
  0x9b   :  { %1299 = vmatmul.mubr.f32.gmra.mrb[6].mxu0 %v128_v52 }
  0x9c   :  { %1301 = vmatprep.mubr.f32.mxu0 %v129_v53 }
  0x9d   :  { %1616 = vmatpush3.bf16.msra.mxu0 %v1613_v11  ;;  %v691_v11 = vld [vmem:[#allocation10 + $0x10] sm:$0xff] }
  0x9e   :  { %1618 = vmatprep.subr.bf16.mxu0 %v1617_v14 }
  0x9f   :  { %1302 = vmatmul.mubr.f32.gmra.mrb[8].mxu0 %v130_v54 }
  0xa0   :  { %1304 = vmatprep.mubr.f32.mxu0 %v131_v55 }
  0xa1   :  { %1620 = vmatpush3.bf16.msra.mxu0 %v1617_v14  ;;  %v1637_v14 = vpack.c.bf16 %v692_v13, %v691_v11 }
  0xa2   :  { %1622 = vmatprep.subr.bf16.mxu0 %v1621_v17 }
  0xa3   :  { %1305 = vmatmul.mubr.f32.gmra.mrb[10].mxu0 %v132_v56 }
  0xa4   :  { %1307 = vmatprep.mubr.f32.mxu0 %v133_v57 }
  0xa5   :  { %1624 = vmatpush3.bf16.msra.mxu0 %v1621_v17  ;;  %v1641_v17 = vpack.c.bf16 %v694_v16, %v693_v15  ;;  %v703_v15 = vld [vmem:[#allocation10 + $0x70] sm:$0xff]  ;;  %v704_v16 = vld [vmem:[#allocation10 + $0x78] sm:$0xff] }
  0xa6   :  { %1626 = vmatprep.subr.bf16.mxu0 %v1625_v20 }
  0xa7   :  { %1308 = vmatmul.mubr.f32.gmra.mrb[12].mxu0 %v134_v58 }
  0xa8   :  { %1310 = vmatprep.mubr.f32.mxu0 %v135_v59 }
  0xa9   :  { %1628 = vmatpush3.bf16.msra.mxu0 %v1625_v20  ;;  %v1645_v20 = vpack.c.bf16 %v696_v19, %v695_v18  ;;  %v873_v18 = vld [vmem:[#allocation11] sm:$0xff]  ;;  %v874_v19 = vld [vmem:[#allocation11 + $0x8] sm:$0xff] }
  0xaa   :  { %1630 = vmatprep.subr.bf16.mxu0 %v1629_v8 }
  0xab   :  { %1311 = vmatmul.mubr.f32.gmra.mrb[14].mxu0 %v136_v60 }
  0xad   :  { %1632 = vmatpush3.bf16.msra.mxu0 %v1629_v8 }
 0x162   :  { %v1291_v22 = vpop.f32.mrb[0].mxu0 }
 0x163   :  { %v232_v23 = vadd.f32 %v1291_v22, %v1092_v21  ;;  %v226_v24 = vpop.f32.mrb[1].mxu0  ;;  %v698_v22 = vld [vmem:[#allocation10 + $0x48] sm:$0xff] }
 0x164   :  { %v227_v25 = vadd.f32 %v1092_v21, %v226_v24  ;;  %v699_v24 = vld [vmem:[#allocation10 + $0x50] sm:$0xff] }
 0x165   :  { %v306_v28 = vmax.f32 %v232_v23, 0.0 }
 0x166   :  { %v1294_v26 = vpop.f32.mrb[2].mxu0  ;;  %v305_v27 = vmax.f32 %v227_v25, 0.0  ;;  %v700_v25 = vld [vmem:[#allocation10 + $0x58] sm:$0xff] }
 0x167   :  { %v242_v29 = vadd.f32 %v1294_v26, %v1092_v21  ;;  %v236_v30 = vpop.f32.mrb[3].mxu0  ;;  %v1653_v26 = vpack.c.bf16 %v700_v25, %v699_v24  ;;  %v877_v24 = vld [vmem:[#allocation11 + $0x20] sm:$0xff]  ;;  %v878_v25 = vld [vmem:[#allocation11 + $0x28] sm:$0xff] }
 0x168   :  { %v237_v31 = vadd.f32 %v1092_v21, %v236_v30  ;;  %1345 = vmatprep.mubr.f32.mxu1 %v305_v27  ;;  %v701_v27 = vld [vmem:[#allocation10 + $0x60] sm:$0xff] }
 0x169   :  { %v308_v32 = vmax.f32 %v242_v29, 0.0  ;;  %1346 = vmatmul.mubr.f32.vlgmr.msra.gmra.mrb[0].mxu1 %v306_v28  ;;  %v702_v28 = vld [vmem:[#allocation10 + $0x68] sm:$0xff]  ;;  %v1093_v30 = vld [vmem:[%s2139_s4] ss:$0 sm:$0xff] }
 0x16a   :  { %v307_v33 = vmax.f32 %v237_v31, 0.0  ;;  %v1297_v34 = vpop.f32.mrb[4].mxu0  ;;  %1636 = vmatpush3.bf16.msra.mxu1 %v1633_v12  ;;  %v1657_v29 = vpack.c.bf16 %v702_v28, %v701_v27  ;;  %v879_v27 = vld [vmem:[#allocation11 + $0x30] sm:$0xff]  ;;  %v880_v28 = vld [vmem:[#allocation11 + $0x38] sm:$0xff] }
 0x16b   :  { %v252_v35 = vadd.f32 %v1297_v34, %v1092_v21  ;;  %v246_v36 = vpop.f32.mrb[5].mxu0  ;;  %1638 = vmatprep.subr.bf16.mxu1 %v1637_v14 }
 0x16c   :  { %v247_v37 = vadd.f32 %v1092_v21, %v246_v36  ;;  %1348 = vmatprep.mubr.f32.mxu1 %v307_v33 }
 0x16d   :  { %v310_v38 = vmax.f32 %v252_v35, 0.0  ;;  %1349 = vmatmul.mubr.f32.gmra.mrb[2].mxu1 %v308_v32 }
 0x16e   :  { %v309_v39 = vmax.f32 %v247_v37, 0.0  ;;  %v1300_v40 = vpop.f32.mrb[6].mxu0  ;;  %1640 = vmatpush3.bf16.msra.mxu1 %v1637_v14 }
 0x16f   :  { %v262_v41 = vadd.f32 %v1300_v40, %v1092_v21  ;;  %v256_v42 = vpop.f32.mrb[7].mxu0  ;;  %1642 = vmatprep.subr.bf16.mxu1 %v1641_v17 }
 0x170   :  { %1351 = vmatprep.mubr.f32.mxu1 %v309_v39  ;;  %v257_v43 = vadd.f32 %v1092_v21, %v256_v42 }
 0x171   :  { %v312_v44 = vmax.f32 %v262_v41, 0.0  ;;  %1352 = vmatmul.mubr.f32.gmra.mrb[4].mxu1 %v310_v38 }
 0x172   :  { %v311_v45 = vmax.f32 %v257_v43, 0.0  ;;  %v1303_v46 = vpop.f32.mrb[8].mxu0  ;;  %1644 = vmatpush3.bf16.msra.mxu1 %v1641_v17  ;;  %v1661_v17 = vpack.c.bf16 %v704_v16, %v703_v15 }
 0x173   :  { %v272_v47 = vadd.f32 %v1303_v46, %v1092_v21  ;;  %v266_v48 = vpop.f32.mrb[9].mxu0  ;;  %1646 = vmatprep.subr.bf16.mxu1 %v1645_v20 }
 0x174   :  { %1354 = vmatprep.mubr.f32.mxu1 %v311_v45  ;;  %v267_v49 = vadd.f32 %v1092_v21, %v266_v48 }
 0x175   :  { %1355 = vmatmul.mubr.f32.gmra.mrb[6].mxu1 %v312_v44  ;;  %v314_v50 = vmax.f32 %v272_v47, 0.0 }
 0x176   :  { %v313_v51 = vmax.f32 %v267_v49, 0.0  ;;  %v1306_v52 = vpop.f32.mrb[10].mxu0  ;;  %1648 = vmatpush3.bf16.msra.mxu1 %v1645_v20  ;;  %v875_v20 = vld [vmem:[#allocation11 + $0x10] sm:$0xff] }
 0x177   :  { %v282_v53 = vadd.f32 %v1306_v52, %v1092_v21  ;;  %v276_v54 = vpop.f32.mrb[11].mxu0 }
 0x178   :  { %1357 = vmatprep.mubr.f32.mxu1 %v313_v51  ;;  %v277_v55 = vadd.f32 %v1092_v21, %v276_v54 }
 0x179   :  { %1358 = vmatmul.mubr.f32.gmra.mrb[8].mxu1 %v314_v50  ;;  %v316_v56 = vmax.f32 %v282_v53, 0.0 }
 0x17a   :  { %v315_v57 = vmax.f32 %v277_v55, 0.0  ;;  %v1309_v58 = vpop.f32.mrb[12].mxu0 }
 0x17b   :  { %v292_v59 = vadd.f32 %v1309_v58, %v1092_v21  ;;  %v286_v60 = vpop.f32.mrb[13].mxu0 }
 0x17c   :  { %1360 = vmatprep.mubr.f32.mxu1 %v315_v57  ;;  %v287_v61 = vadd.f32 %v1092_v21, %v286_v60 }
 0x17d   :  { %1361 = vmatmul.mubr.f32.gmra.mrb[10].mxu1 %v316_v56  ;;  %v318_v62 = vmax.f32 %v292_v59, 0.0 }
 0x17e   :  { %v317_v63 = vmax.f32 %v287_v61, 0.0  ;;  %v1312_v0 = vpop.f32.mrb[14].mxu0 }
 0x17f   :  { %v302_v1 = vadd.f32 %v1312_v0, %v1092_v21  ;;  %v296_v2 = vpop.f32.mrb[15].mxu0 }
 0x180   :  { %1363 = vmatprep.mubr.f32.mxu1 %v317_v63  ;;  %v297_v3 = vadd.f32 %v1092_v21, %v296_v2  ;;  %v697_v21 = vld [vmem:[#allocation10 + $0x40] sm:$0xff] }
 0x181   :  { %1364 = vmatmul.mubr.f32.gmra.mrb[12].mxu1 %v318_v62  ;;  %v320_v4 = vmax.f32 %v302_v1, 0.0  ;;  %v1649_v23 = vpack.c.bf16 %v698_v22, %v697_v21  ;;  %v1665_v21 = vpack.c.bf16 %v874_v19, %v873_v18  ;;  %v876_v22 = vld [vmem:[#allocation11 + $0x18] sm:$0xff] }
 0x182   :  { %v319_v5 = vmax.f32 %v297_v3, 0.0 }
 0x183   :  { %1650 = vmatprep.subr.bf16.mxu1 %v1649_v23  ;;  %1666 = vmatprep.subr.bf16.mxu0 %v1665_v21 }
 0x184   :  { %1366 = vmatprep.mubr.f32.mxu1 %v319_v5  ;;  %1652 = vmatpush3.bf16.msra.mxu1 %v1649_v23  ;;  %v1669_v23 = vpack.c.bf16 %v876_v22, %v875_v20 }
 0x185   :  { %1367 = vmatmul.mubr.f32.gmra.mrb[14].mxu1 %v320_v4  ;;  %1654 = vmatprep.subr.bf16.mxu1 %v1653_v26 }
 0x188   :  { %1656 = vmatpush3.bf16.msra.mxu1 %v1653_v26  ;;  %v1673_v26 = vpack.c.bf16 %v878_v25, %v877_v24  ;;  %v887_v24 = vld [vmem:[#allocation11 + $0x70] sm:$0xff]  ;;  %v888_v25 = vld [vmem:[#allocation11 + $0x78] sm:$0xff] }
 0x189   :  { %1658 = vmatprep.subr.bf16.mxu1 %v1657_v29 }
 0x18c   :  { %1660 = vmatpush3.bf16.msra.mxu1 %v1657_v29  ;;  %v2072_v29 = vpack.c.bf16 %v880_v28, %v879_v27  ;;  %v1095_v27 = vld [vmem:[%s2143_s8] ss:$0 sm:$0xff] }
 0x18d   :  { %1662 = vmatprep.subr.bf16.mxu1 %v1661_v17 }
 0x190   :  { %1664 = vmatpush3.bf16.msra.mxu1 %v1661_v17 }
 0x191   :  { %1697 = vmatprep.subr.bf16.mxu1 %v1665_v21 }
 0x23c   :  { %v1347_v31 = vpop.f32.mrb[0].mxu1 }
 0x23d   :  { %v416_v32 = vadd.f32 %v1347_v31, %v1093_v30  ;;  %v410_v33 = vpop.f32.mrb[1].mxu1  ;;  %v882_v31 = vld [vmem:[#allocation11 + $0x48] sm:$0xff] }
 0x23e   :  { %v411_v34 = vadd.f32 %v1093_v30, %v410_v33  ;;  %v883_v33 = vld [vmem:[#allocation11 + $0x50] sm:$0xff] }
 0x23f   :  { %v490_v37 = vmax.f32 %v416_v32, 0.0 }
 0x240   :  { %v489_v35 = vmax.f32 %v411_v34, 0.0  ;;  %v1350_v36 = vpop.f32.mrb[2].mxu1  ;;  %v884_v34 = vld [vmem:[#allocation11 + $0x58] sm:$0xff] }
 0x241   :  { %v426_v38 = vadd.f32 %v1350_v36, %v1093_v30  ;;  %v420_v39 = vpop.f32.mrb[3].mxu1  ;;  %v885_v36 = vld [vmem:[#allocation11 + $0x60] sm:$0xff] }
 0x242   :  { %v421_v40 = vadd.f32 %v1093_v30, %v420_v39  ;;  %1401 = vmatprep.mubr.f32.mxu0 %v489_v35  ;;  %v2079_v35 = vpack.c.bf16 %v884_v34, %v883_v33  ;;  %v2091_v39 = vld [vmem:[%s2141_s6] ss:$0 sm:$0xff] }
 0x243   :  { %v492_v41 = vmax.f32 %v426_v38, 0.0  ;;  %1402 = vmatmul.mubr.f32.vlgmr.msra.gmra.mrb[16].mxu0 %v490_v37  ;;  %v886_v37 = vld [vmem:[#allocation11 + $0x68] sm:$0xff] }
 0x244   :  { %v491_v42 = vmax.f32 %v421_v40, 0.0  ;;  %v1353_v43 = vpop.f32.mrb[4].mxu1  ;;  %1668 = vmatpush3.bf16.msra.mxu0 %v1665_v21  ;;  %v2083_v38 = vpack.c.bf16 %v886_v37, %v885_v36 }
 0x245   :  { %v436_v44 = vadd.f32 %v1353_v43, %v1093_v30  ;;  %v430_v45 = vpop.f32.mrb[5].mxu1  ;;  %1670 = vmatprep.subr.bf16.mxu0 %v1669_v23 }
 0x246   :  { %v431_v46 = vadd.f32 %v1093_v30, %v430_v45  ;;  %1404 = vmatprep.mubr.f32.mxu0 %v491_v42 }
 0x247   :  { %v494_v47 = vmax.f32 %v436_v44, 0.0  ;;  %1405 = vmatmul.mubr.f32.gmra.mrb[18].mxu0 %v492_v41 }
 0x248   :  { %v493_v48 = vmax.f32 %v431_v46, 0.0  ;;  %v1356_v49 = vpop.f32.mrb[6].mxu1  ;;  %1672 = vmatpush3.bf16.msra.mxu0 %v1669_v23 }
 0x249   :  { %v446_v50 = vadd.f32 %v1356_v49, %v1093_v30  ;;  %v440_v51 = vpop.f32.mrb[7].mxu1  ;;  %1674 = vmatprep.subr.bf16.mxu0 %v1673_v26 }
 0x24a   :  { %1407 = vmatprep.mubr.f32.mxu0 %v493_v48  ;;  %v441_v52 = vadd.f32 %v1093_v30, %v440_v51 }
 0x24b   :  { %v496_v53 = vmax.f32 %v446_v50, 0.0  ;;  %1408 = vmatmul.mubr.f32.gmra.mrb[20].mxu0 %v494_v47 }
 0x24c   :  { %v495_v54 = vmax.f32 %v441_v52, 0.0  ;;  %v1359_v55 = vpop.f32.mrb[8].mxu1  ;;  %1676 = vmatpush3.bf16.msra.mxu0 %v1673_v26 }
 0x24d   :  { %v456_v56 = vadd.f32 %v1359_v55, %v1093_v30  ;;  %v450_v57 = vpop.f32.mrb[9].mxu1  ;;  %1678 = vmatprep.subr.bf16.mxu0 %v2072_v29 }
 0x24e   :  { %1410 = vmatprep.mubr.f32.mxu0 %v495_v54  ;;  %v451_v58 = vadd.f32 %v1093_v30, %v450_v57 }
 0x24f   :  { %1411 = vmatmul.mubr.f32.gmra.mrb[22].mxu0 %v496_v53  ;;  %v498_v59 = vmax.f32 %v456_v56, 0.0 }
 0x250   :  { %v497_v60 = vmax.f32 %v451_v58, 0.0  ;;  %v1362_v61 = vpop.f32.mrb[10].mxu1  ;;  %1680 = vmatpush3.bf16.msra.mxu0 %v2072_v29 }
 0x251   :  { %v466_v62 = vadd.f32 %v1362_v61, %v1093_v30  ;;  %v460_v63 = vpop.f32.mrb[11].mxu1 }
 0x252   :  { %1413 = vmatprep.mubr.f32.mxu0 %v497_v60  ;;  %v461_v0 = vadd.f32 %v1093_v30, %v460_v63 }
 0x253   :  { %1414 = vmatmul.mubr.f32.gmra.mrb[24].mxu0 %v498_v59  ;;  %v500_v1 = vmax.f32 %v466_v62, 0.0 }
 0x254   :  { %v499_v2 = vmax.f32 %v461_v0, 0.0  ;;  %v1365_v3 = vpop.f32.mrb[12].mxu1 }
 0x255   :  { %v476_v4 = vadd.f32 %v1365_v3, %v1093_v30  ;;  %v470_v5 = vpop.f32.mrb[13].mxu1 }
 0x256   :  { %1416 = vmatprep.mubr.f32.mxu0 %v499_v2  ;;  %v471_v6 = vadd.f32 %v1093_v30, %v470_v5 }
 0x257   :  { %1417 = vmatmul.mubr.f32.gmra.mrb[26].mxu0 %v500_v1  ;;  %v502_v7 = vmax.f32 %v476_v4, 0.0 }
 0x258   :  { %v501_v8 = vmax.f32 %v471_v6, 0.0  ;;  %v1368_v9 = vpop.f32.mrb[14].mxu1 }
 0x259   :  { %v486_v10 = vadd.f32 %v1368_v9, %v1093_v30  ;;  %v480_v11 = vpop.f32.mrb[15].mxu1 }
 0x25a   :  { %1419 = vmatprep.mubr.f32.mxu0 %v501_v8  ;;  %v481_v12 = vadd.f32 %v1093_v30, %v480_v11  ;;  %v881_v30 = vld [vmem:[#allocation11 + $0x40] sm:$0xff] }
 0x25b   :  { %1420 = vmatmul.mubr.f32.gmra.mrb[28].mxu0 %v502_v7  ;;  %v504_v13 = vmax.f32 %v486_v10, 0.0  ;;  %v2075_v32 = vpack.c.bf16 %v882_v31, %v881_v30 }
 0x25c   :  { %v503_v14 = vmax.f32 %v481_v12, 0.0 }
 0x25d   :  { %1682 = vmatprep.subr.bf16.mxu0 %v2075_v32 }
 0x25e   :  { %1422 = vmatprep.mubr.f32.mxu0 %v503_v14  ;;  %1684 = vmatpush3.bf16.msra.mxu0 %v2075_v32 }
 0x25f   :  { %1423 = vmatmul.mubr.f32.gmra.mrb[30].mxu0 %v504_v13  ;;  %1686 = vmatprep.subr.bf16.mxu0 %v2079_v35 }
 0x262   :  { %1688 = vmatpush3.bf16.msra.mxu0 %v2079_v35 }
 0x263   :  { %1690 = vmatprep.subr.bf16.mxu0 %v2083_v38 }
 0x266   :  { %1692 = vmatpush3.bf16.msra.mxu0 %v2083_v38 }
 0x316   :  { %v1403_v40 = vpop.f32.mrb[16].mxu0 }
 0x317   :  { %v600_v41 = vadd.f32 %v1403_v40, %v2091_v39  ;;  %v594_v42 = vpop.f32.mrb[17].mxu0 }
 0x318   :  { %v595_v43 = vadd.f32 %v2091_v39, %v594_v42 }
 0x319   :  { %v674_v46 = vmax.f32 %v600_v41, 0.0 }
 0x31a   :  { %v673_v44 = vmax.f32 %v595_v43, 0.0  ;;  %v1406_v45 = vpop.f32.mrb[18].mxu0 }
 0x31b   :  { %v610_v47 = vadd.f32 %v1406_v45, %v2091_v39  ;;  %v604_v48 = vpop.f32.mrb[19].mxu0 }
 0x31c   :  { %v605_v49 = vadd.f32 %v2091_v39, %v604_v48  ;;  %1457 = vmatprep.mubr.f32.mxu1 %v673_v44 }
 0x31d   :  { %1458 = vmatmul.mubr.f32.vlgmr.msra.gmra.mrb[16].mxu1 %v674_v46  ;;  %v676_v52 = vmax.f32 %v610_v47, 0.0 }
 0x31e   :  { %v675_v50 = vmax.f32 %v605_v49, 0.0  ;;  %v1409_v51 = vpop.f32.mrb[20].mxu0  ;;  %1705 = vmatpush3.bf16.msra.mxu1 %v1665_v21 }
 0x31f   :  { %v620_v53 = vadd.f32 %v1409_v51, %v2091_v39  ;;  %v614_v54 = vpop.f32.mrb[21].mxu0  ;;  %1698 = vmatprep.subr.bf16.mxu1 %v1669_v23 }
 0x320   :  { %v615_v55 = vadd.f32 %v2091_v39, %v614_v54  ;;  %1460 = vmatprep.mubr.f32.mxu1 %v675_v50 }
 0x321   :  { %v678_v56 = vmax.f32 %v620_v53, 0.0  ;;  %1461 = vmatmul.mubr.f32.gmra.mrb[18].mxu1 %v676_v52 }
 0x322   :  { %v677_v57 = vmax.f32 %v615_v55, 0.0  ;;  %v1412_v58 = vpop.f32.mrb[22].mxu0  ;;  %1706 = vmatpush3.bf16.msra.mxu1 %v1669_v23 }
 0x323   :  { %v630_v59 = vadd.f32 %v1412_v58, %v2091_v39  ;;  %v624_v60 = vpop.f32.mrb[23].mxu0  ;;  %1699 = vmatprep.subr.bf16.mxu1 %v1673_v26 }
 0x324   :  { %1463 = vmatprep.mubr.f32.mxu1 %v677_v57  ;;  %v625_v61 = vadd.f32 %v2091_v39, %v624_v60 }
 0x325   :  { %v680_v62 = vmax.f32 %v630_v59, 0.0  ;;  %1464 = vmatmul.mubr.f32.gmra.mrb[20].mxu1 %v678_v56 }
 0x326   :  { %v679_v63 = vmax.f32 %v625_v61, 0.0  ;;  %v1415_v0 = vpop.f32.mrb[24].mxu0  ;;  %1707 = vmatpush3.bf16.msra.mxu1 %v1673_v26  ;;  %v1693_v26 = vpack.c.bf16 %v888_v25, %v887_v24 }
 0x327   :  { %v640_v1 = vadd.f32 %v1415_v0, %v2091_v39  ;;  %v634_v2 = vpop.f32.mrb[25].mxu0  ;;  %1700 = vmatprep.subr.bf16.mxu1 %v2072_v29 }
 0x328   :  { %1466 = vmatprep.mubr.f32.mxu1 %v679_v63  ;;  %v635_v3 = vadd.f32 %v2091_v39, %v634_v2  ;;  %1694 = vmatprep.subr.bf16.mxu0 %v1693_v26 }
 0x329   :  { %1467 = vmatmul.mubr.f32.gmra.mrb[22].mxu1 %v680_v62  ;;  %v682_v4 = vmax.f32 %v640_v1, 0.0  ;;  %1696 = vmatpush3.bf16.msra.mxu0 %v1693_v26 }
 0x32a   :  { %v681_v5 = vmax.f32 %v635_v3, 0.0  ;;  %v1418_v6 = vpop.f32.mrb[26].mxu0  ;;  %1708 = vmatpush3.bf16.msra.mxu1 %v2072_v29 }
 0x32b   :  { %v650_v7 = vadd.f32 %v1418_v6, %v2091_v39  ;;  %v644_v8 = vpop.f32.mrb[27].mxu0  ;;  %1701 = vmatprep.subr.bf16.mxu1 %v2075_v32 }
 0x32c   :  { %1469 = vmatprep.mubr.f32.mxu1 %v681_v5  ;;  %v645_v9 = vadd.f32 %v2091_v39, %v644_v8 }
 0x32d   :  { %1470 = vmatmul.mubr.f32.gmra.mrb[24].mxu1 %v682_v4  ;;  %v684_v10 = vmax.f32 %v650_v7, 0.0 }
 0x32e   :  { %v683_v11 = vmax.f32 %v645_v9, 0.0  ;;  %v1421_v12 = vpop.f32.mrb[28].mxu0  ;;  %1709 = vmatpush3.bf16.msra.mxu1 %v2075_v32 }
 0x32f   :  { %v660_v13 = vadd.f32 %v1421_v12, %v2091_v39  ;;  %v654_v14 = vpop.f32.mrb[29].mxu0  ;;  %1702 = vmatprep.subr.bf16.mxu1 %v2079_v35  ;;  %v1096_v12 = vld [vmem:[%s2145_s10] ss:$0 sm:$0xff]  ;;  %s1894_s10 = smov [#allocation13]  }
 0x330   :  { %1472 = vmatprep.mubr.f32.mxu1 %v683_v11  ;;  %v655_v15 = vadd.f32 %v2091_v39, %v654_v14  ;;  %s1080_s17 = sshll.u32 %s1894_s10, 4  ;;  %s1081_s17 = int_to_ptr.vmem [resolvable:$true] %s1080_s17 }
 0x331   :  { %1473 = vmatmul.mubr.f32.gmra.mrb[26].mxu1 %v684_v10  ;;  %v686_v16 = vmax.f32 %v660_v13, 0.0  ;;  %s1854_s5 = scalar_lea.vmem %s1081_s17, 16  ;;  %s1858_s20 = scalar_lea.vmem %s1081_s17, 32 }
 0x332   :  { %v685_v17 = vmax.f32 %v655_v15, 0.0  ;;  %v1424_v18 = vpop.f32.mrb[30].mxu0  ;;  %1710 = vmatpush3.bf16.msra.mxu1 %v2079_v35  ;;  %p1855_p6 = scmp.ne.s32.totalorder %s1081_s17, %s1854_s5  ;;  %p1859_p7 = scmp.lt.s32.totalorder %s1081_s17, %s1081_s17 }
 0x333   :  { %v670_v19 = vadd.f32 %v1424_v18, %v2091_v39  ;;  %v664_v20 = vpop.f32.mrb[31].mxu0  ;;  %1703 = vmatprep.subr.bf16.mxu1 %v2083_v38  ;;  %p1860_p8 = scmp.lt.s32.totalorder %s1858_s20, %s1854_s5 }
 0x334   :  { %1475 = vmatprep.mubr.f32.mxu1 %v685_v17  ;;  %v665_v21 = vadd.f32 %v2091_v39, %v664_v20 }
 0x335   :  { %1476 = vmatmul.mubr.f32.gmra.mrb[28].mxu1 %v686_v16  ;;  %v688_v22 = vmax.f32 %v670_v19, 0.0  ;;  %p1861_p9 = por %p1860_p8, %p1859_p7 }
 0x336   :  { %v687_v23 = vmax.f32 %v665_v21, 0.0  ;;  %1711 = vmatpush3.bf16.msra.mxu1 %v2083_v38 }
 0x337   :  { %1704 = vmatprep.subr.bf16.mxu1 %v1693_v26  ;;  %p1862_p10 = pnand %p1861_p9, %p1855_p6 }
 0x338   :  { %1478 = vmatprep.mubr.f32.mxu1 %v687_v23 }
 0x339   :  { %1479 = vmatmul.mubr.f32.gmra.mrb[30].mxu1 %v688_v22 }
 0x33a   :  { %1712 = vmatpush3.bf16.msra.mxu1 %v1693_v26 }
 0x3f0   :  { %v1459_v28 = vpop.f32.mrb[16].mxu1 }
 0x3f1   :  { %v784_v29 = vadd.f32 %v1459_v28, %v1095_v27  ;;  %v778_v30 = vpop.f32.mrb[17].mxu1 }
 0x3f2   :  { %v779_v31 = vadd.f32 %v1095_v27, %v778_v30 }
 0x3f3   :  { %v858_v34 = vmax.f32 %v784_v29, 0.0 }
 0x3f4   :  { %v857_v32 = vmax.f32 %v779_v31, 0.0  ;;  %v1462_v33 = vpop.f32.mrb[18].mxu1 }
 0x3f5   :  { %v794_v35 = vadd.f32 %v1462_v33, %v1095_v27  ;;  %v788_v36 = vpop.f32.mrb[19].mxu1 }
 0x3f6   :  { %v789_v37 = vadd.f32 %v1095_v27, %v788_v36  ;;  %1513 = vmatprep.mubr.f32.mxu0 %v857_v32 }
 0x3f7   :  { %1514 = vmatmul.mubr.f32.vlgmr.msra.gmra.mrb[32].mxu0 %v858_v34  ;;  %v860_v40 = vmax.f32 %v794_v35, 0.0 }
 0x3f8   :  { %v859_v38 = vmax.f32 %v789_v37, 0.0  ;;  %v1465_v39 = vpop.f32.mrb[20].mxu1 }
 0x3f9   :  { %v804_v41 = vadd.f32 %v1465_v39, %v1095_v27  ;;  %v798_v42 = vpop.f32.mrb[21].mxu1 }
 0x3fa   :  { %v799_v43 = vadd.f32 %v1095_v27, %v798_v42  ;;  %1516 = vmatprep.mubr.f32.mxu0 %v859_v38 }
 0x3fb   :  { %v862_v44 = vmax.f32 %v804_v41, 0.0  ;;  %1517 = vmatmul.mubr.f32.gmra.mrb[34].mxu0 %v860_v40 }
 0x3fc   :  { %v861_v45 = vmax.f32 %v799_v43, 0.0  ;;  %v1468_v46 = vpop.f32.mrb[22].mxu1 }
 0x3fd   :  { %v814_v47 = vadd.f32 %v1468_v46, %v1095_v27  ;;  %v808_v48 = vpop.f32.mrb[23].mxu1 }
 0x3fe   :  { %1519 = vmatprep.mubr.f32.mxu0 %v861_v45  ;;  %v809_v49 = vadd.f32 %v1095_v27, %v808_v48 }
 0x3ff   :  { %v864_v50 = vmax.f32 %v814_v47, 0.0  ;;  %1520 = vmatmul.mubr.f32.gmra.mrb[36].mxu0 %v862_v44 }
 0x400   :  { %v863_v51 = vmax.f32 %v809_v49, 0.0  ;;  %v1471_v52 = vpop.f32.mrb[24].mxu1 }
 0x401   :  { %v824_v53 = vadd.f32 %v1471_v52, %v1095_v27  ;;  %v818_v54 = vpop.f32.mrb[25].mxu1 }
 0x402   :  { %1522 = vmatprep.mubr.f32.mxu0 %v863_v51  ;;  %v819_v55 = vadd.f32 %v1095_v27, %v818_v54 }
 0x403   :  { %1523 = vmatmul.mubr.f32.gmra.mrb[38].mxu0 %v864_v50  ;;  %v866_v56 = vmax.f32 %v824_v53, 0.0 }
 0x404   :  { %v865_v57 = vmax.f32 %v819_v55, 0.0  ;;  %v1474_v58 = vpop.f32.mrb[26].mxu1 }
 0x405   :  { %v834_v59 = vadd.f32 %v1474_v58, %v1095_v27  ;;  %v828_v60 = vpop.f32.mrb[27].mxu1 }
 0x406   :  { %1525 = vmatprep.mubr.f32.mxu1 %v865_v57  ;;  %v829_v61 = vadd.f32 %v1095_v27, %v828_v60 }
 0x407   :  { %1526 = vmatmul.mubr.f32.vlgmr.msra.gmra.mrb[32].mxu1 %v866_v56  ;;  %v868_v62 = vmax.f32 %v834_v59, 0.0 }
 0x408   :  { %v867_v63 = vmax.f32 %v829_v61, 0.0  ;;  %v1477_v0 = vpop.f32.mrb[28].mxu1 }
 0x409   :  { %v844_v1 = vadd.f32 %v1477_v0, %v1095_v27  ;;  %v838_v2 = vpop.f32.mrb[29].mxu1 }
 0x40a   :  { %1528 = vmatprep.mubr.f32.mxu1 %v867_v63  ;;  %v839_v3 = vadd.f32 %v1095_v27, %v838_v2 }
 0x40b   :  { %1529 = vmatmul.mubr.f32.gmra.mrb[34].mxu1 %v868_v62  ;;  %v870_v4 = vmax.f32 %v844_v1, 0.0 }
 0x40c   :  { %v869_v5 = vmax.f32 %v839_v3, 0.0  ;;  %v1480_v6 = vpop.f32.mrb[30].mxu1 }
 0x40d   :  { %v854_v7 = vadd.f32 %v1480_v6, %v1095_v27  ;;  %v848_v8 = vpop.f32.mrb[31].mxu1 }
 0x40e   :  { %1531 = vmatprep.mubr.f32.mxu1 %v869_v5  ;;  %v849_v9 = vadd.f32 %v1095_v27, %v848_v8 }
 0x40f   :  { %1532 = vmatmul.mubr.f32.gmra.mrb[36].mxu1 %v870_v4  ;;  %v872_v10 = vmax.f32 %v854_v7, 0.0 }
 0x410   :  { %v871_v11 = vmax.f32 %v849_v9, 0.0 }
 0x412   :  { %1534 = vmatprep.mubr.f32.mxu1 %v871_v11 }
 0x413   :  { %1535 = vmatmul.mubr.f32.gmra.mrb[38].mxu1 %v872_v10 }
 0x4ca   :  { %v1515_v13 = vpop.f32.mrb[32].mxu0 }
 0x4cb   :  { %v962_v14 = vpop.f32.mrb[33].mxu0  ;;  %v968_v18 = vadd.f32 %v1515_v13, %v1096_v12 }
 0x4cc   :  { %v963_v15 = vadd.f32 %v1096_v12, %v962_v14 }
 0x4ce   :  { %v1518_v16 = vpop.f32.mrb[34].mxu0  ;;  %1041 = vxpose.xlu0.b32.start [1/16] (narrow) %v963_v15, 8 }
 0x4cf   :  { %v972_v17 = vpop.f32.mrb[35].mxu0  ;;  %v978_v24 = vadd.f32 %v1518_v16, %v1096_v12 }
 0x4d0   :  { %v973_v21 = vadd.f32 %v1096_v12, %v972_v17 }
 0x4d2   :  { %v1521_v19 = vpop.f32.mrb[36].mxu0  ;;  %1042 = vxpose.xlu0.b32.cont [2/16] (narrow) %v968_v18, 8 }
 0x4d3   :  { %v982_v20 = vpop.f32.mrb[37].mxu0  ;;  %v988_v30 = vadd.f32 %v1521_v19, %v1096_v12 }
 0x4d4   :  { %v983_v27 = vadd.f32 %v1096_v12, %v982_v20 }
 0x4d6   :  { %1043 = vxpose.xlu0.b32.cont [3/16] (narrow) %v973_v21, 8  ;;  %v1524_v22 = vpop.f32.mrb[38].mxu0 }
 0x4d7   :  { %v992_v23 = vpop.f32.mrb[39].mxu0  ;;  %v998_v36 = vadd.f32 %v1524_v22, %v1096_v12 }
 0x4d8   :  { %v993_v33 = vadd.f32 %v1096_v12, %v992_v23 }
 0x4da   :  { %1044 = vxpose.xlu0.b32.cont [4/16] (narrow) %v978_v24, 8  ;;  %v1527_v25 = vpop.f32.mrb[32].mxu1 }
 0x4db   :  { %v1002_v26 = vpop.f32.mrb[33].mxu1  ;;  %v1008_v38 = vadd.f32 %v1527_v25, %v1096_v12 }
 0x4dc   :  { %v1003_v37 = vadd.f32 %v1096_v12, %v1002_v26 }
 0x4de   :  { %1045 = vxpose.xlu0.b32.cont [5/16] (narrow) %v983_v27, 8  ;;  %v1530_v28 = vpop.f32.mrb[34].mxu1 }
 0x4df   :  { %v1012_v29 = vpop.f32.mrb[35].mxu1  ;;  %v1018_v40 = vadd.f32 %v1530_v28, %v1096_v12 }
 0x4e0   :  { %v1013_v39 = vadd.f32 %v1096_v12, %v1012_v29 }
 0x4e2   :  { %1046 = vxpose.xlu0.b32.cont [6/16] (narrow) %v988_v30, 8  ;;  %v1533_v31 = vpop.f32.mrb[36].mxu1 }
 0x4e3   :  { %v1022_v32 = vpop.f32.mrb[37].mxu1  ;;  %v1028_v42 = vadd.f32 %v1533_v31, %v1096_v12 }
 0x4e4   :  { %v1023_v41 = vadd.f32 %v1096_v12, %v1022_v32 }
 0x4e6   :  { %1047 = vxpose.xlu0.b32.cont [7/16] (narrow) %v993_v33, 8  ;;  %v1536_v34 = vpop.f32.mrb[38].mxu1 }
 0x4e7   :  { %v1032_v35 = vpop.f32.mrb[39].mxu1  ;;  %v1038_v44 = vadd.f32 %v1536_v34, %v1096_v12 }
 0x4e8   :  { %v1033_v43 = vadd.f32 %v1096_v12, %v1032_v35 }
 0x4ea   :  { %1048 = vxpose.xlu0.b32.cont [8/16] (narrow) %v998_v36, 8 }
 0x4ee   :  { %1049 = vxpose.xlu0.b32.cont [9/16] (narrow) %v1003_v37, 8 }
 0x4f2   :  { %1050 = vxpose.xlu0.b32.cont [10/16] (narrow) %v1008_v38, 8 }
 0x4f6   :  { %1051 = vxpose.xlu0.b32.cont [11/16] (narrow) %v1013_v39, 8 }
 0x4fa   :  { %1052 = vxpose.xlu0.b32.cont [12/16] (narrow) %v1018_v40, 8 }
 0x4fe   :  { %1053 = vxpose.xlu0.b32.cont [13/16] (narrow) %v1023_v41, 8 }
 0x502   :  { %1054 = vxpose.xlu0.b32.cont [14/16] (narrow) %v1028_v42, 8 }
 0x506   :  { %1055 = vxpose.xlu0.b32.cont [15/16] (narrow) %v1033_v43, 8 }
 0x50a   :  { %1056 = vxpose.xlu0.b32.end [16/16] (narrow) %v1038_v44, 8 }
 0x54e   :  { %v1057_v45 = vpop.trf.xlu0 }
 0x54f   :  { %1073 = vst [vmem:[#allocation13] sm:$0x1] %v1057_v45 }
 0x550   :  { %1865 = shalt.err (!%p1862_p10)
}
 0x551   :  { %s1866_s22 = scalar_lea.hbm %s2146_s11, 16 }
 0x552   :  { %p1867_p11 = scmp.ne.s32.totalorder %s2146_s11, %s1866_s22  ;;  %p1870_p12 = scmp.lt.u32.totalorder %s1866_s22, %s2146_s11 }
 0x554   :  { %p1872_p13 = pnand %p1870_p12, %p1867_p11 }
 0x556   :  { %1875 = shalt.err (!%p1872_p13)
}
 0x557   :  { %1083 = dma.vmem_to_hbm [thread:$0]  %s1081_s17, 16, %s2146_s11, [#allocation4]  }
 0x558   :  { %1884 = dma.done.wait [#allocation4], 16  }
 0x559   :  { %1885 = vsyncadd [#allocation4], 4294967280 }
 0x55a   :  { %1087 = vsyncpa [#allocation3], 1 }
 0x55b   :  { %1088 = vsyncpa [#allocation6], 1 }
 0x55c   :  { %1089 = vsyncpa [#allocation9], 1 }
 0x55d   :  { %1090 = vsyncpa [#allocation12], 1 }
 0x55e   :  { %1091 = vsyncpa [#allocation4], 1 }

</bundles_post_ra>
